<compile_context>
chip_gen: v5e
topology: v5e:2x2
jax: 0.10.0
libtpu: 0.0.40
codegen_flags: <defaults>
</compile_context>

<pallas_src>
import jax
import jax.numpy as jnp
import numpy as np
from jax.experimental import pallas as pl
from jax.experimental.pallas import tpu as pltpu


# ----------------------------------------------------------------------------
# Pallas kernel factory: full 2-layer LSTM recurrence + output Linear
# ----------------------------------------------------------------------------
def make_lstm_kernel(T, Bp, H):
    def lstm_kernel(x_ref,                      # (T*Bp, D)   time-major, batch-padded
                    wih1_ref, whh1_ref, b1_ref, # (D, 4H), (H, 4H), (1, 4H)
                    w2_ref, b2_ref,             # (2H, 4H) = [Wih1; Whh1], (1, 4H)
                    wout_ref, bout_ref,         # (1, H), (1, 1)
                    out_ref, last_ref):         # (Bp, 1), (Bp, H)
        # Hoisted layer-0 input projection: ONE big matmul, bias folded in.
        xw1 = (jnp.dot(x_ref[...], wih1_ref[...],
                       preferred_element_type=jnp.float32)
               + b1_ref[...])                                   # (T*Bp, 4H)

        # Hoist remaining weight loads / broadcasts out of the time loop.
        whh1 = whh1_ref[...]                                    # (H, 4H)
        w2 = w2_ref[...]                                        # (2H, 4H)
        b2 = jnp.broadcast_to(b2_ref[...], (Bp, 4 * H))         # broadcast once

        def gates_to_hc(g, c_prev):
            # One sigmoid + one tanh over the full (Bp, 4H) vreg, then slice.
            s = jax.nn.sigmoid(g)
            th = jnp.tanh(g)
            i = s[:, 0 * H:1 * H]
            f = s[:, 1 * H:2 * H]
            gg = th[:, 2 * H:3 * H]
            o = s[:, 3 * H:4 * H]
            c_new = f * c_prev + i * gg
            h_new = o * jnp.tanh(c_new)
            return h_new, c_new

        zeros = jnp.zeros((Bp, H), jnp.float32)
        h1, c1, h2, c2 = zeros, zeros, zeros, zeros

        # Fully unrolled static time loop (T is small & static): adjacent steps'
        # independent work (layer-1 of t vs layer-0 of t+1) can be co-scheduled.
        for t in range(T):
            # Layer 0: recurrent matmul only (input proj precomputed above).
            g1 = xw1[t * Bp:(t + 1) * Bp, :] + jnp.dot(
                h1, whh1, preferred_element_type=jnp.float32)
            h1, c1 = gates_to_hc(g1, c1)

            # Layer 1: fused input+recurrent matmul. Concat order [h1, h2]
            # matches the row-stacking order [Wih1; Whh1] of w2.
            hcat = jnp.concatenate([h1, h2], axis=-1)           # (Bp, 2H)
            g2 = jnp.dot(hcat, w2, preferred_element_type=jnp.float32) + b2
            h2, c2 = gates_to_hc(g2, c2)

        # last_out = lstm_out[:, -1, :] == final hidden state of the top layer.
        last_ref[...] = h2
        # Linear(H -> 1) as multiply + lane reduce (no N=1 MXU matmul).
        out_ref[...] = (jnp.sum(h2 * wout_ref[...], axis=-1, keepdims=True)
                        + bout_ref[...])

    return lstm_kernel


# ----------------------------------------------------------------------------
# Wrapper
# ----------------------------------------------------------------------------
def sequence_regression_lstm(x, params):
    """x: (B, T, D) float32, batch_first (PyTorch convention). Returns (output, last_out)."""
    B, T, D = x.shape
    H = params["whh_l0"].shape[1]  # whh_l0: (4H, H)

    # Pad batch to a full f32 sublane tile so all loop-body tiles are unmasked.
    Bp = max(8, ((B + 7) // 8) * 8)

    x_tm = jnp.transpose(x, (1, 0, 2))                          # (T, B, D)
    x_tm = jnp.pad(x_tm, ((0, 0), (0, Bp - B), (0, 0)))         # (T, Bp, D)
    x2d = x_tm.reshape(T * Bp, D)                               # (T*Bp, D)

    # Layer-1 fused weight: rows = [Wih_l1^T ; Whh_l1^T]  -> (2H, 4H)
    w2 = jnp.concatenate([params["wih_l1"].T, params["whh_l1"].T], axis=0)

    ins = (
        x2d,
        params["wih_l0"].T,                                     # (D, 4H)
        params["whh_l0"].T,                                     # (H, 4H)
        (params["bih_l0"] + params["bhh_l0"]).reshape(1, -1),   # (1, 4H)
        w2,                                                     # (2H, 4H)
        (params["bih_l1"] + params["bhh_l1"]).reshape(1, -1),   # (1, 4H)
        params["w_out"].reshape(1, -1),                         # (1, H)
        params["b_out"].reshape(1, 1),                          # (1, 1)
    )

    out_shapes = (
        jax.ShapeDtypeStruct((Bp, 1), jnp.float32),   # output (padded batch)
        jax.ShapeDtypeStruct((Bp, H), jnp.float32),   # last_out (padded batch)
    )

    vmem = lambda: pl.BlockSpec(memory_space=pltpu.MemorySpace.VMEM)
    out_p, last_p = pl.pallas_call(
        make_lstm_kernel(T, Bp, H),
        out_shape=out_shapes,
        in_specs=[vmem() for _ in ins],
        out_specs=(vmem(), vmem()),
    )(*ins)

    # Drop the padded batch rows.
    return out_p[:B], last_p[:B]


# ----------------------------------------------------------------------------
# Pure-JAX reference (same math) for a correctness check
# ----------------------------------------------------------------------------
def reference(x, params):
    B, T, D = x.shape
    H = params["whh_l0"].shape[1]

    def cell(x_t, h, c, wih, whh, bih, bhh):
        gates = x_t @ wih.T + h @ whh.T + bih + bhh
        i = jax.nn.sigmoid(gates[:, 0 * H:1 * H])
        f = jax.nn.sigmoid(gates[:, 1 * H:2 * H])
        g = jnp.tanh(gates[:, 2 * H:3 * H])
        o = jax.nn.sigmoid(gates[:, 3 * H:4 * H])
        c_new = f * c + i * g
        return o * jnp.tanh(c_new), c_new

    h1 = c1 = h2 = c2 = jnp.zeros((B, H), jnp.float32)
    for t in range(T):
        x_t = x[:, t, :]
        h1, c1 = cell(x_t, h1, c1, params["wih_l0"], params["whh_l0"],
                      params["bih_l0"], params["bhh_l0"])
        h2, c2 = cell(h1, h2, c2, params["wih_l1"], params["whh_l1"],
                      params["bih_l1"], params["bhh_l1"])
    last_out = h2
    output = last_out @ params["w_out"].T + params["b_out"]
    return output, last_out


# ----------------------------------------------------------------------------
# Deterministic parameter init (matches PyTorch shapes; uniform(-1/sqrt(H), 1/sqrt(H)))
# ----------------------------------------------------------------------------
def init_params(key, input_dim, hidden):
    k = 1.0 / np.sqrt(hidden)
    names_shapes = [
        ("wih_l0", (4 * hidden, input_dim)),
        ("whh_l0", (4 * hidden, hidden)),
        ("bih_l0", (4 * hidden,)),
        ("bhh_l0", (4 * hidden,)),
        ("wih_l1", (4 * hidden, hidden)),
        ("whh_l1", (4 * hidden, hidden)),
        ("bih_l1", (4 * hidden,)),
        ("bhh_l1", (4 * hidden,)),
        ("w_out", (1, hidden)),
        ("b_out", (1,)),
    ]
    params = {}
    keys = jax.random.split(key, len(names_shapes))
    for kk, (name, shape) in zip(keys, names_shapes):
        params[name] = jax.random.uniform(kk, shape, jnp.float32, -k, k)
    return params


if __name__ == "__main__":
    B, T, D, H = 2, 8, 20, 32

    key = jax.random.PRNGKey(0)
    kx, kp = jax.random.split(key)
    x = jax.random.normal(kx, (B, T, D), jnp.float32)
    params = init_params(kp, D, H)

    out, last_out = sequence_regression_lstm(x, params)
    out, last_out = jax.block_until_ready((out, last_out))

    ref_out, ref_last = reference(x, params)
    np.testing.assert_allclose(np.asarray(last_out), np.asarray(ref_last),
                               rtol=1e-2, atol=1e-3)
    np.testing.assert_allclose(np.asarray(out), np.asarray(ref_out),
                               rtol=1e-2, atol=1e-3)

    assert out.shape == (B, 1) and last_out.shape == (B, H)
    print("KERNEL_OK")
</pallas_src>

<mosaic_0001>
module attributes {stable_mosaic.version = 11 : i64} {
  func.func @lstm_kernel(%arg0: memref<64x20xf32, #tpu.memory_space<vmem>>, %arg1: memref<20x128xf32, #tpu.memory_space<vmem>>, %arg2: memref<32x128xf32, #tpu.memory_space<vmem>>, %arg3: memref<1x128xf32, #tpu.memory_space<vmem>>, %arg4: memref<64x128xf32, #tpu.memory_space<vmem>>, %arg5: memref<1x128xf32, #tpu.memory_space<vmem>>, %arg6: memref<1x32xf32, #tpu.memory_space<vmem>>, %arg7: memref<1x1xf32, #tpu.memory_space<vmem>>, %arg8: memref<8x1xf32, #tpu.memory_space<vmem>>, %arg9: memref<8x32xf32, #tpu.memory_space<vmem>>) attributes {dimension_semantics = [], scalar_prefetch = 0 : i64, scratch_operands = 0 : i64, tpu.core_type = #tpu.core_type<tc>} {
    %c0 = arith.constant 0 : index
    %c0_0 = arith.constant 0 : index
    %0 = vector.load %arg0[%c0, %c0_0] : memref<64x20xf32, #tpu.memory_space<vmem>>, vector<64x20xf32>
    %c0_1 = arith.constant 0 : index
    %c0_2 = arith.constant 0 : index
    %1 = vector.load %arg1[%c0_1, %c0_2] : memref<20x128xf32, #tpu.memory_space<vmem>>, vector<20x128xf32>
    %cst = arith.constant dense<0.000000e+00> : vector<64x128xf32>
    %2 = tpu.matmul %0, %1, %cst {dimension_numbers = #tpu.dot_dimension_numbers<[1], [0], [0], [1], [0, 0, 1, 1], [], []>} : vector<64x20xf32>, vector<20x128xf32>, vector<64x128xf32> -> vector<64x128xf32>
    %c0_3 = arith.constant 0 : index
    %c0_4 = arith.constant 0 : index
    %3 = vector.load %arg3[%c0_3, %c0_4] : memref<1x128xf32, #tpu.memory_space<vmem>>, vector<1x128xf32>
    %4 = vector.broadcast %3 : vector<1x128xf32> to vector<64x128xf32>
    %5 = arith.addf %2, %4 : vector<64x128xf32>
    %c0_5 = arith.constant 0 : index
    %c0_6 = arith.constant 0 : index
    %6 = vector.load %arg2[%c0_5, %c0_6] : memref<32x128xf32, #tpu.memory_space<vmem>>, vector<32x128xf32>
    %c0_7 = arith.constant 0 : index
    %c0_8 = arith.constant 0 : index
    %7 = vector.load %arg4[%c0_7, %c0_8] : memref<64x128xf32, #tpu.memory_space<vmem>>, vector<64x128xf32>
    %c0_9 = arith.constant 0 : index
    %c0_10 = arith.constant 0 : index
    %8 = vector.load %arg5[%c0_9, %c0_10] : memref<1x128xf32, #tpu.memory_space<vmem>>, vector<1x128xf32>
    %9 = vector.shape_cast %8 : vector<1x128xf32> to vector<1x128xf32>
    %10 = vector.broadcast %9 : vector<1x128xf32> to vector<8x128xf32>
    %cst_11 = arith.constant 0.000000e+00 : f32
    %11 = vector.broadcast %cst_11 : f32 to vector<8x32xf32>
    %12 = vector.extract_strided_slice %5 {offsets = [0, 0], sizes = [8, 128], strides = [1, 1]} : vector<64x128xf32> to vector<8x128xf32>
    %cst_12 = arith.constant dense<0.000000e+00> : vector<8x128xf32>
    %13 = tpu.matmul %11, %6, %cst_12 {dimension_numbers = #tpu.dot_dimension_numbers<[1], [0], [0], [1], [0, 0, 1, 1], [], []>} : vector<8x32xf32>, vector<32x128xf32>, vector<8x128xf32> -> vector<8x128xf32>
    %14 = arith.addf %12, %13 : vector<8x128xf32>
    %15 = arith.negf %14 : vector<8x128xf32>
    %16 = math.exp %15 : vector<8x128xf32>
    %cst_13 = arith.constant 1.000000e+00 : f32
    %17 = vector.broadcast %cst_13 : f32 to vector<8x128xf32>
    %18 = arith.addf %17, %16 : vector<8x128xf32>
    %19 = arith.divf %17, %18 : vector<8x128xf32>
    %20 = math.tanh %14 : vector<8x128xf32>
    %21 = vector.extract_strided_slice %19 {offsets = [0, 0], sizes = [8, 32], strides = [1, 1]} : vector<8x128xf32> to vector<8x32xf32>
    %22 = vector.extract_strided_slice %19 {offsets = [0, 32], sizes = [8, 32], strides = [1, 1]} : vector<8x128xf32> to vector<8x32xf32>
    %23 = vector.extract_strided_slice %20 {offsets = [0, 64], sizes = [8, 32], strides = [1, 1]} : vector<8x128xf32> to vector<8x32xf32>
    %24 = vector.extract_strided_slice %19 {offsets = [0, 96], sizes = [8, 32], strides = [1, 1]} : vector<8x128xf32> to vector<8x32xf32>
    %25 = arith.mulf %22, %11 : vector<8x32xf32>
    %26 = arith.mulf %21, %23 : vector<8x32xf32>
    %27 = arith.addf %25, %26 : vector<8x32xf32>
    %28 = math.tanh %27 : vector<8x32xf32>
    %29 = arith.mulf %24, %28 : vector<8x32xf32>
    %30 = tpu.concatenate %29, %11 in 1 : vector<8x32xf32>, vector<8x32xf32> -> vector<8x64xf32>
    %cst_14 = arith.constant dense<0.000000e+00> : vector<8x128xf32>
    %31 = tpu.matmul %30, %7, %cst_14 {dimension_numbers = #tpu.dot_dimension_numbers<[1], [0], [0], [1], [0, 0, 1, 1], [], []>} : vector<8x64xf32>, vector<64x128xf32>, vector<8x128xf32> -> vector<8x128xf32>
    %32 = arith.addf %31, %10 : vector<8x128xf32>
    %33 = arith.negf %32 : vector<8x128xf32>
    %34 = math.exp %33 : vector<8x128xf32>
    %cst_15 = arith.constant 1.000000e+00 : f32
    %35 = vector.broadcast %cst_15 : f32 to vector<8x128xf32>
    %36 = arith.addf %35, %34 : vector<8x128xf32>
    %37 = arith.divf %35, %36 : vector<8x128xf32>
    %38 = math.tanh %32 : vector<8x128xf32>
    %39 = vector.extract_strided_slice %37 {offsets = [0, 0], sizes = [8, 32], strides = [1, 1]} : vector<8x128xf32> to vector<8x32xf32>
    %40 = vector.extract_strided_slice %37 {offsets = [0, 32], sizes = [8, 32], strides = [1, 1]} : vector<8x128xf32> to vector<8x32xf32>
    %41 = vector.extract_strided_slice %38 {offsets = [0, 64], sizes = [8, 32], strides = [1, 1]} : vector<8x128xf32> to vector<8x32xf32>
    %42 = vector.extract_strided_slice %37 {offsets = [0, 96], sizes = [8, 32], strides = [1, 1]} : vector<8x128xf32> to vector<8x32xf32>
    %43 = arith.mulf %40, %11 : vector<8x32xf32>
    %44 = arith.mulf %39, %41 : vector<8x32xf32>
    %45 = arith.addf %43, %44 : vector<8x32xf32>
    %46 = math.tanh %45 : vector<8x32xf32>
    %47 = arith.mulf %42, %46 : vector<8x32xf32>
    %48 = vector.extract_strided_slice %5 {offsets = [8, 0], sizes = [8, 128], strides = [1, 1]} : vector<64x128xf32> to vector<8x128xf32>
    %cst_16 = arith.constant dense<0.000000e+00> : vector<8x128xf32>
    %49 = tpu.matmul %29, %6, %cst_16 {dimension_numbers = #tpu.dot_dimension_numbers<[1], [0], [0], [1], [0, 0, 1, 1], [], []>} : vector<8x32xf32>, vector<32x128xf32>, vector<8x128xf32> -> vector<8x128xf32>
    %50 = arith.addf %48, %49 : vector<8x128xf32>
    %51 = arith.negf %50 : vector<8x128xf32>
    %52 = math.exp %51 : vector<8x128xf32>
    %cst_17 = arith.constant 1.000000e+00 : f32
    %53 = vector.broadcast %cst_17 : f32 to vector<8x128xf32>
    %54 = arith.addf %53, %52 : vector<8x128xf32>
    %55 = arith.divf %53, %54 : vector<8x128xf32>
    %56 = math.tanh %50 : vector<8x128xf32>
    %57 = vector.extract_strided_slice %55 {offsets = [0, 0], sizes = [8, 32], strides = [1, 1]} : vector<8x128xf32> to vector<8x32xf32>
    %58 = vector.extract_strided_slice %55 {offsets = [0, 32], sizes = [8, 32], strides = [1, 1]} : vector<8x128xf32> to vector<8x32xf32>
    %59 = vector.extract_strided_slice %56 {offsets = [0, 64], sizes = [8, 32], strides = [1, 1]} : vector<8x128xf32> to vector<8x32xf32>
    %60 = vector.extract_strided_slice %55 {offsets = [0, 96], sizes = [8, 32], strides = [1, 1]} : vector<8x128xf32> to vector<8x32xf32>
    %61 = arith.mulf %58, %27 : vector<8x32xf32>
    %62 = arith.mulf %57, %59 : vector<8x32xf32>
    %63 = arith.addf %61, %62 : vector<8x32xf32>
    %64 = math.tanh %63 : vector<8x32xf32>
    %65 = arith.mulf %60, %64 : vector<8x32xf32>
    %66 = tpu.concatenate %65, %47 in 1 : vector<8x32xf32>, vector<8x32xf32> -> vector<8x64xf32>
    %cst_18 = arith.constant dense<0.000000e+00> : vector<8x128xf32>
    %67 = tpu.matmul %66, %7, %cst_18 {dimension_numbers = #tpu.dot_dimension_numbers<[1], [0], [0], [1], [0, 0, 1, 1], [], []>} : vector<8x64xf32>, vector<64x128xf32>, vector<8x128xf32> -> vector<8x128xf32>
    %68 = arith.addf %67, %10 : vector<8x128xf32>
    %69 = arith.negf %68 : vector<8x128xf32>
    %70 = math.exp %69 : vector<8x128xf32>
    %cst_19 = arith.constant 1.000000e+00 : f32
    %71 = vector.broadcast %cst_19 : f32 to vector<8x128xf32>
    %72 = arith.addf %71, %70 : vector<8x128xf32>
    %73 = arith.divf %71, %72 : vector<8x128xf32>
    %74 = math.tanh %68 : vector<8x128xf32>
    %75 = vector.extract_strided_slice %73 {offsets = [0, 0], sizes = [8, 32], strides = [1, 1]} : vector<8x128xf32> to vector<8x32xf32>
    %76 = vector.extract_strided_slice %73 {offsets = [0, 32], sizes = [8, 32], strides = [1, 1]} : vector<8x128xf32> to vector<8x32xf32>
    %77 = vector.extract_strided_slice %74 {offsets = [0, 64], sizes = [8, 32], strides = [1, 1]} : vector<8x128xf32> to vector<8x32xf32>
    %78 = vector.extract_strided_slice %73 {offsets = [0, 96], sizes = [8, 32], strides = [1, 1]} : vector<8x128xf32> to vector<8x32xf32>
    %79 = arith.mulf %76, %45 : vector<8x32xf32>
    %80 = arith.mulf %75, %77 : vector<8x32xf32>
    %81 = arith.addf %79, %80 : vector<8x32xf32>
    %82 = math.tanh %81 : vector<8x32xf32>
    %83 = arith.mulf %78, %82 : vector<8x32xf32>
    %84 = vector.extract_strided_slice %5 {offsets = [16, 0], sizes = [8, 128], strides = [1, 1]} : vector<64x128xf32> to vector<8x128xf32>
    %cst_20 = arith.constant dense<0.000000e+00> : vector<8x128xf32>
    %85 = tpu.matmul %65, %6, %cst_20 {dimension_numbers = #tpu.dot_dimension_numbers<[1], [0], [0], [1], [0, 0, 1, 1], [], []>} : vector<8x32xf32>, vector<32x128xf32>, vector<8x128xf32> -> vector<8x128xf32>
    %86 = arith.addf %84, %85 : vector<8x128xf32>
    %87 = arith.negf %86 : vector<8x128xf32>
    %88 = math.exp %87 : vector<8x128xf32>
    %cst_21 = arith.constant 1.000000e+00 : f32
    %89 = vector.broadcast %cst_21 : f32 to vector<8x128xf32>
    %90 = arith.addf %89, %88 : vector<8x128xf32>
    %91 = arith.divf %89, %90 : vector<8x128xf32>
    %92 = math.tanh %86 : vector<8x128xf32>
    %93 = vector.extract_strided_slice %91 {offsets = [0, 0], sizes = [8, 32], strides = [1, 1]} : vector<8x128xf32> to vector<8x32xf32>
    %94 = vector.extract_strided_slice %91 {offsets = [0, 32], sizes = [8, 32], strides = [1, 1]} : vector<8x128xf32> to vector<8x32xf32>
    %95 = vector.extract_strided_slice %92 {offsets = [0, 64], sizes = [8, 32], strides = [1, 1]} : vector<8x128xf32> to vector<8x32xf32>
    %96 = vector.extract_strided_slice %91 {offsets = [0, 96], sizes = [8, 32], strides = [1, 1]} : vector<8x128xf32> to vector<8x32xf32>
    %97 = arith.mulf %94, %63 : vector<8x32xf32>
    %98 = arith.mulf %93, %95 : vector<8x32xf32>
    %99 = arith.addf %97, %98 : vector<8x32xf32>
    %100 = math.tanh %99 : vector<8x32xf32>
    %101 = arith.mulf %96, %100 : vector<8x32xf32>
    %102 = tpu.concatenate %101, %83 in 1 : vector<8x32xf32>, vector<8x32xf32> -> vector<8x64xf32>
    %cst_22 = arith.constant dense<0.000000e+00> : vector<8x128xf32>
    %103 = tpu.matmul %102, %7, %cst_22 {dimension_numbers = #tpu.dot_dimension_numbers<[1], [0], [0], [1], [0, 0, 1, 1], [], []>} : vector<8x64xf32>, vector<64x128xf32>, vector<8x128xf32> -> vector<8x128xf32>
    %104 = arith.addf %103, %10 : vector<8x128xf32>
    %105 = arith.negf %104 : vector<8x128xf32>
    %106 = math.exp %105 : vector<8x128xf32>
    %cst_23 = arith.constant 1.000000e+00 : f32
    %107 = vector.broadcast %cst_23 : f32 to vector<8x128xf32>
    %108 = arith.addf %107, %106 : vector<8x128xf32>
    %109 = arith.divf %107, %108 : vector<8x128xf32>
    %110 = math.tanh %104 : vector<8x128xf32>
    %111 = vector.extract_strided_slice %109 {offsets = [0, 0], sizes = [8, 32], strides = [1, 1]} : vector<8x128xf32> to vector<8x32xf32>
    %112 = vector.extract_strided_slice %109 {offsets = [0, 32], sizes = [8, 32], strides = [1, 1]} : vector<8x128xf32> to vector<8x32xf32>
    %113 = vector.extract_strided_slice %110 {offsets = [0, 64], sizes = [8, 32], strides = [1, 1]} : vector<8x128xf32> to vector<8x32xf32>
    %114 = vector.extract_strided_slice %109 {offsets = [0, 96], sizes = [8, 32], strides = [1, 1]} : vector<8x128xf32> to vector<8x32xf32>
    %115 = arith.mulf %112, %81 : vector<8x32xf32>
    %116 = arith.mulf %111, %113 : vector<8x32xf32>
    %117 = arith.addf %115, %116 : vector<8x32xf32>
    %118 = math.tanh %117 : vector<8x32xf32>
    %119 = arith.mulf %114, %118 : vector<8x32xf32>
    %120 = vector.extract_strided_slice %5 {offsets = [24, 0], sizes = [8, 128], strides = [1, 1]} : vector<64x128xf32> to vector<8x128xf32>
    %cst_24 = arith.constant dense<0.000000e+00> : vector<8x128xf32>
    %121 = tpu.matmul %101, %6, %cst_24 {dimension_numbers = #tpu.dot_dimension_numbers<[1], [0], [0], [1], [0, 0, 1, 1], [], []>} : vector<8x32xf32>, vector<32x128xf32>, vector<8x128xf32> -> vector<8x128xf32>
    %122 = arith.addf %120, %121 : vector<8x128xf32>
    %123 = arith.negf %122 : vector<8x128xf32>
    %124 = math.exp %123 : vector<8x128xf32>
    %cst_25 = arith.constant 1.000000e+00 : f32
    %125 = vector.broadcast %cst_25 : f32 to vector<8x128xf32>
    %126 = arith.addf %125, %124 : vector<8x128xf32>
    %127 = arith.divf %125, %126 : vector<8x128xf32>
    %128 = math.tanh %122 : vector<8x128xf32>
    %129 = vector.extract_strided_slice %127 {offsets = [0, 0], sizes = [8, 32], strides = [1, 1]} : vector<8x128xf32> to vector<8x32xf32>
    %130 = vector.extract_strided_slice %127 {offsets = [0, 32], sizes = [8, 32], strides = [1, 1]} : vector<8x128xf32> to vector<8x32xf32>
    %131 = vector.extract_strided_slice %128 {offsets = [0, 64], sizes = [8, 32], strides = [1, 1]} : vector<8x128xf32> to vector<8x32xf32>
    %132 = vector.extract_strided_slice %127 {offsets = [0, 96], sizes = [8, 32], strides = [1, 1]} : vector<8x128xf32> to vector<8x32xf32>
    %133 = arith.mulf %130, %99 : vector<8x32xf32>
    %134 = arith.mulf %129, %131 : vector<8x32xf32>
    %135 = arith.addf %133, %134 : vector<8x32xf32>
    %136 = math.tanh %135 : vector<8x32xf32>
    %137 = arith.mulf %132, %136 : vector<8x32xf32>
    %138 = tpu.concatenate %137, %119 in 1 : vector<8x32xf32>, vector<8x32xf32> -> vector<8x64xf32>
    %cst_26 = arith.constant dense<0.000000e+00> : vector<8x128xf32>
    %139 = tpu.matmul %138, %7, %cst_26 {dimension_numbers = #tpu.dot_dimension_numbers<[1], [0], [0], [1], [0, 0, 1, 1], [], []>} : vector<8x64xf32>, vector<64x128xf32>, vector<8x128xf32> -> vector<8x128xf32>
    %140 = arith.addf %139, %10 : vector<8x128xf32>
    %141 = arith.negf %140 : vector<8x128xf32>
    %142 = math.exp %141 : vector<8x128xf32>
    %cst_27 = arith.constant 1.000000e+00 : f32
    %143 = vector.broadcast %cst_27 : f32 to vector<8x128xf32>
    %144 = arith.addf %143, %142 : vector<8x128xf32>
    %145 = arith.divf %143, %144 : vector<8x128xf32>
    %146 = math.tanh %140 : vector<8x128xf32>
    %147 = vector.extract_strided_slice %145 {offsets = [0, 0], sizes = [8, 32], strides = [1, 1]} : vector<8x128xf32> to vector<8x32xf32>
    %148 = vector.extract_strided_slice %145 {offsets = [0, 32], sizes = [8, 32], strides = [1, 1]} : vector<8x128xf32> to vector<8x32xf32>
    %149 = vector.extract_strided_slice %146 {offsets = [0, 64], sizes = [8, 32], strides = [1, 1]} : vector<8x128xf32> to vector<8x32xf32>
    %150 = vector.extract_strided_slice %145 {offsets = [0, 96], sizes = [8, 32], strides = [1, 1]} : vector<8x128xf32> to vector<8x32xf32>
    %151 = arith.mulf %148, %117 : vector<8x32xf32>
    %152 = arith.mulf %147, %149 : vector<8x32xf32>
    %153 = arith.addf %151, %152 : vector<8x32xf32>
    %154 = math.tanh %153 : vector<8x32xf32>
    %155 = arith.mulf %150, %154 : vector<8x32xf32>
    %156 = vector.extract_strided_slice %5 {offsets = [32, 0], sizes = [8, 128], strides = [1, 1]} : vector<64x128xf32> to vector<8x128xf32>
    %cst_28 = arith.constant dense<0.000000e+00> : vector<8x128xf32>
    %157 = tpu.matmul %137, %6, %cst_28 {dimension_numbers = #tpu.dot_dimension_numbers<[1], [0], [0], [1], [0, 0, 1, 1], [], []>} : vector<8x32xf32>, vector<32x128xf32>, vector<8x128xf32> -> vector<8x128xf32>
    %158 = arith.addf %156, %157 : vector<8x128xf32>
    %159 = arith.negf %158 : vector<8x128xf32>
    %160 = math.exp %159 : vector<8x128xf32>
    %cst_29 = arith.constant 1.000000e+00 : f32
    %161 = vector.broadcast %cst_29 : f32 to vector<8x128xf32>
    %162 = arith.addf %161, %160 : vector<8x128xf32>
    %163 = arith.divf %161, %162 : vector<8x128xf32>
    %164 = math.tanh %158 : vector<8x128xf32>
    %165 = vector.extract_strided_slice %163 {offsets = [0, 0], sizes = [8, 32], strides = [1, 1]} : vector<8x128xf32> to vector<8x32xf32>
    %166 = vector.extract_strided_slice %163 {offsets = [0, 32], sizes = [8, 32], strides = [1, 1]} : vector<8x128xf32> to vector<8x32xf32>
    %167 = vector.extract_strided_slice %164 {offsets = [0, 64], sizes = [8, 32], strides = [1, 1]} : vector<8x128xf32> to vector<8x32xf32>
    %168 = vector.extract_strided_slice %163 {offsets = [0, 96], sizes = [8, 32], strides = [1, 1]} : vector<8x128xf32> to vector<8x32xf32>
    %169 = arith.mulf %166, %135 : vector<8x32xf32>
    %170 = arith.mulf %165, %167 : vector<8x32xf32>
    %171 = arith.addf %169, %170 : vector<8x32xf32>
    %172 = math.tanh %171 : vector<8x32xf32>
    %173 = arith.mulf %168, %172 : vector<8x32xf32>
    %174 = tpu.concatenate %173, %155 in 1 : vector<8x32xf32>, vector<8x32xf32> -> vector<8x64xf32>
    %cst_30 = arith.constant dense<0.000000e+00> : vector<8x128xf32>
    %175 = tpu.matmul %174, %7, %cst_30 {dimension_numbers = #tpu.dot_dimension_numbers<[1], [0], [0], [1], [0, 0, 1, 1], [], []>} : vector<8x64xf32>, vector<64x128xf32>, vector<8x128xf32> -> vector<8x128xf32>
    %176 = arith.addf %175, %10 : vector<8x128xf32>
    %177 = arith.negf %176 : vector<8x128xf32>
    %178 = math.exp %177 : vector<8x128xf32>
    %cst_31 = arith.constant 1.000000e+00 : f32
    %179 = vector.broadcast %cst_31 : f32 to vector<8x128xf32>
    %180 = arith.addf %179, %178 : vector<8x128xf32>
    %181 = arith.divf %179, %180 : vector<8x128xf32>
    %182 = math.tanh %176 : vector<8x128xf32>
    %183 = vector.extract_strided_slice %181 {offsets = [0, 0], sizes = [8, 32], strides = [1, 1]} : vector<8x128xf32> to vector<8x32xf32>
    %184 = vector.extract_strided_slice %181 {offsets = [0, 32], sizes = [8, 32], strides = [1, 1]} : vector<8x128xf32> to vector<8x32xf32>
    %185 = vector.extract_strided_slice %182 {offsets = [0, 64], sizes = [8, 32], strides = [1, 1]} : vector<8x128xf32> to vector<8x32xf32>
    %186 = vector.extract_strided_slice %181 {offsets = [0, 96], sizes = [8, 32], strides = [1, 1]} : vector<8x128xf32> to vector<8x32xf32>
    %187 = arith.mulf %184, %153 : vector<8x32xf32>
    %188 = arith.mulf %183, %185 : vector<8x32xf32>
    %189 = arith.addf %187, %188 : vector<8x32xf32>
    %190 = math.tanh %189 : vector<8x32xf32>
    %191 = arith.mulf %186, %190 : vector<8x32xf32>
    %192 = vector.extract_strided_slice %5 {offsets = [40, 0], sizes = [8, 128], strides = [1, 1]} : vector<64x128xf32> to vector<8x128xf32>
    %cst_32 = arith.constant dense<0.000000e+00> : vector<8x128xf32>
    %193 = tpu.matmul %173, %6, %cst_32 {dimension_numbers = #tpu.dot_dimension_numbers<[1], [0], [0], [1], [0, 0, 1, 1], [], []>} : vector<8x32xf32>, vector<32x128xf32>, vector<8x128xf32> -> vector<8x128xf32>
    %194 = arith.addf %192, %193 : vector<8x128xf32>
    %195 = arith.negf %194 : vector<8x128xf32>
    %196 = math.exp %195 : vector<8x128xf32>
    %cst_33 = arith.constant 1.000000e+00 : f32
    %197 = vector.broadcast %cst_33 : f32 to vector<8x128xf32>
    %198 = arith.addf %197, %196 : vector<8x128xf32>
    %199 = arith.divf %197, %198 : vector<8x128xf32>
    %200 = math.tanh %194 : vector<8x128xf32>
    %201 = vector.extract_strided_slice %199 {offsets = [0, 0], sizes = [8, 32], strides = [1, 1]} : vector<8x128xf32> to vector<8x32xf32>
    %202 = vector.extract_strided_slice %199 {offsets = [0, 32], sizes = [8, 32], strides = [1, 1]} : vector<8x128xf32> to vector<8x32xf32>
    %203 = vector.extract_strided_slice %200 {offsets = [0, 64], sizes = [8, 32], strides = [1, 1]} : vector<8x128xf32> to vector<8x32xf32>
    %204 = vector.extract_strided_slice %199 {offsets = [0, 96], sizes = [8, 32], strides = [1, 1]} : vector<8x128xf32> to vector<8x32xf32>
    %205 = arith.mulf %202, %171 : vector<8x32xf32>
    %206 = arith.mulf %201, %203 : vector<8x32xf32>
    %207 = arith.addf %205, %206 : vector<8x32xf32>
    %208 = math.tanh %207 : vector<8x32xf32>
    %209 = arith.mulf %204, %208 : vector<8x32xf32>
    %210 = tpu.concatenate %209, %191 in 1 : vector<8x32xf32>, vector<8x32xf32> -> vector<8x64xf32>
    %cst_34 = arith.constant dense<0.000000e+00> : vector<8x128xf32>
    %211 = tpu.matmul %210, %7, %cst_34 {dimension_numbers = #tpu.dot_dimension_numbers<[1], [0], [0], [1], [0, 0, 1, 1], [], []>} : vector<8x64xf32>, vector<64x128xf32>, vector<8x128xf32> -> vector<8x128xf32>
    %212 = arith.addf %211, %10 : vector<8x128xf32>
    %213 = arith.negf %212 : vector<8x128xf32>
    %214 = math.exp %213 : vector<8x128xf32>
    %cst_35 = arith.constant 1.000000e+00 : f32
    %215 = vector.broadcast %cst_35 : f32 to vector<8x128xf32>
    %216 = arith.addf %215, %214 : vector<8x128xf32>
    %217 = arith.divf %215, %216 : vector<8x128xf32>
    %218 = math.tanh %212 : vector<8x128xf32>
    %219 = vector.extract_strided_slice %217 {offsets = [0, 0], sizes = [8, 32], strides = [1, 1]} : vector<8x128xf32> to vector<8x32xf32>
    %220 = vector.extract_strided_slice %217 {offsets = [0, 32], sizes = [8, 32], strides = [1, 1]} : vector<8x128xf32> to vector<8x32xf32>
    %221 = vector.extract_strided_slice %218 {offsets = [0, 64], sizes = [8, 32], strides = [1, 1]} : vector<8x128xf32> to vector<8x32xf32>
    %222 = vector.extract_strided_slice %217 {offsets = [0, 96], sizes = [8, 32], strides = [1, 1]} : vector<8x128xf32> to vector<8x32xf32>
    %223 = arith.mulf %220, %189 : vector<8x32xf32>
    %224 = arith.mulf %219, %221 : vector<8x32xf32>
    %225 = arith.addf %223, %224 : vector<8x32xf32>
    %226 = math.tanh %225 : vector<8x32xf32>
    %227 = arith.mulf %222, %226 : vector<8x32xf32>
    %228 = vector.extract_strided_slice %5 {offsets = [48, 0], sizes = [8, 128], strides = [1, 1]} : vector<64x128xf32> to vector<8x128xf32>
    %cst_36 = arith.constant dense<0.000000e+00> : vector<8x128xf32>
    %229 = tpu.matmul %209, %6, %cst_36 {dimension_numbers = #tpu.dot_dimension_numbers<[1], [0], [0], [1], [0, 0, 1, 1], [], []>} : vector<8x32xf32>, vector<32x128xf32>, vector<8x128xf32> -> vector<8x128xf32>
    %230 = arith.addf %228, %229 : vector<8x128xf32>
    %231 = arith.negf %230 : vector<8x128xf32>
    %232 = math.exp %231 : vector<8x128xf32>
    %cst_37 = arith.constant 1.000000e+00 : f32
    %233 = vector.broadcast %cst_37 : f32 to vector<8x128xf32>
    %234 = arith.addf %233, %232 : vector<8x128xf32>
    %235 = arith.divf %233, %234 : vector<8x128xf32>
    %236 = math.tanh %230 : vector<8x128xf32>
    %237 = vector.extract_strided_slice %235 {offsets = [0, 0], sizes = [8, 32], strides = [1, 1]} : vector<8x128xf32> to vector<8x32xf32>
    %238 = vector.extract_strided_slice %235 {offsets = [0, 32], sizes = [8, 32], strides = [1, 1]} : vector<8x128xf32> to vector<8x32xf32>
    %239 = vector.extract_strided_slice %236 {offsets = [0, 64], sizes = [8, 32], strides = [1, 1]} : vector<8x128xf32> to vector<8x32xf32>
    %240 = vector.extract_strided_slice %235 {offsets = [0, 96], sizes = [8, 32], strides = [1, 1]} : vector<8x128xf32> to vector<8x32xf32>
    %241 = arith.mulf %238, %207 : vector<8x32xf32>
    %242 = arith.mulf %237, %239 : vector<8x32xf32>
    %243 = arith.addf %241, %242 : vector<8x32xf32>
    %244 = math.tanh %243 : vector<8x32xf32>
    %245 = arith.mulf %240, %244 : vector<8x32xf32>
    %246 = tpu.concatenate %245, %227 in 1 : vector<8x32xf32>, vector<8x32xf32> -> vector<8x64xf32>
    %cst_38 = arith.constant dense<0.000000e+00> : vector<8x128xf32>
    %247 = tpu.matmul %246, %7, %cst_38 {dimension_numbers = #tpu.dot_dimension_numbers<[1], [0], [0], [1], [0, 0, 1, 1], [], []>} : vector<8x64xf32>, vector<64x128xf32>, vector<8x128xf32> -> vector<8x128xf32>
    %248 = arith.addf %247, %10 : vector<8x128xf32>
    %249 = arith.negf %248 : vector<8x128xf32>
    %250 = math.exp %249 : vector<8x128xf32>
    %cst_39 = arith.constant 1.000000e+00 : f32
    %251 = vector.broadcast %cst_39 : f32 to vector<8x128xf32>
    %252 = arith.addf %251, %250 : vector<8x128xf32>
    %253 = arith.divf %251, %252 : vector<8x128xf32>
    %254 = math.tanh %248 : vector<8x128xf32>
    %255 = vector.extract_strided_slice %253 {offsets = [0, 0], sizes = [8, 32], strides = [1, 1]} : vector<8x128xf32> to vector<8x32xf32>
    %256 = vector.extract_strided_slice %253 {offsets = [0, 32], sizes = [8, 32], strides = [1, 1]} : vector<8x128xf32> to vector<8x32xf32>
    %257 = vector.extract_strided_slice %254 {offsets = [0, 64], sizes = [8, 32], strides = [1, 1]} : vector<8x128xf32> to vector<8x32xf32>
    %258 = vector.extract_strided_slice %253 {offsets = [0, 96], sizes = [8, 32], strides = [1, 1]} : vector<8x128xf32> to vector<8x32xf32>
    %259 = arith.mulf %256, %225 : vector<8x32xf32>
    %260 = arith.mulf %255, %257 : vector<8x32xf32>
    %261 = arith.addf %259, %260 : vector<8x32xf32>
    %262 = math.tanh %261 : vector<8x32xf32>
    %263 = arith.mulf %258, %262 : vector<8x32xf32>
    %264 = vector.extract_strided_slice %5 {offsets = [56, 0], sizes = [8, 128], strides = [1, 1]} : vector<64x128xf32> to vector<8x128xf32>
    %cst_40 = arith.constant dense<0.000000e+00> : vector<8x128xf32>
    %265 = tpu.matmul %245, %6, %cst_40 {dimension_numbers = #tpu.dot_dimension_numbers<[1], [0], [0], [1], [0, 0, 1, 1], [], []>} : vector<8x32xf32>, vector<32x128xf32>, vector<8x128xf32> -> vector<8x128xf32>
    %266 = arith.addf %264, %265 : vector<8x128xf32>
    %267 = arith.negf %266 : vector<8x128xf32>
    %268 = math.exp %267 : vector<8x128xf32>
    %cst_41 = arith.constant 1.000000e+00 : f32
    %269 = vector.broadcast %cst_41 : f32 to vector<8x128xf32>
    %270 = arith.addf %269, %268 : vector<8x128xf32>
    %271 = arith.divf %269, %270 : vector<8x128xf32>
    %272 = math.tanh %266 : vector<8x128xf32>
    %273 = vector.extract_strided_slice %271 {offsets = [0, 0], sizes = [8, 32], strides = [1, 1]} : vector<8x128xf32> to vector<8x32xf32>
    %274 = vector.extract_strided_slice %271 {offsets = [0, 32], sizes = [8, 32], strides = [1, 1]} : vector<8x128xf32> to vector<8x32xf32>
    %275 = vector.extract_strided_slice %272 {offsets = [0, 64], sizes = [8, 32], strides = [1, 1]} : vector<8x128xf32> to vector<8x32xf32>
    %276 = vector.extract_strided_slice %271 {offsets = [0, 96], sizes = [8, 32], strides = [1, 1]} : vector<8x128xf32> to vector<8x32xf32>
    %277 = arith.mulf %274, %243 : vector<8x32xf32>
    %278 = arith.mulf %273, %275 : vector<8x32xf32>
    %279 = arith.addf %277, %278 : vector<8x32xf32>
    %280 = math.tanh %279 : vector<8x32xf32>
    %281 = arith.mulf %276, %280 : vector<8x32xf32>
    %282 = tpu.concatenate %281, %263 in 1 : vector<8x32xf32>, vector<8x32xf32> -> vector<8x64xf32>
    %cst_42 = arith.constant dense<0.000000e+00> : vector<8x128xf32>
    %283 = tpu.matmul %282, %7, %cst_42 {dimension_numbers = #tpu.dot_dimension_numbers<[1], [0], [0], [1], [0, 0, 1, 1], [], []>} : vector<8x64xf32>, vector<64x128xf32>, vector<8x128xf32> -> vector<8x128xf32>
    %284 = arith.addf %283, %10 : vector<8x128xf32>
    %285 = arith.negf %284 : vector<8x128xf32>
    %286 = math.exp %285 : vector<8x128xf32>
    %cst_43 = arith.constant 1.000000e+00 : f32
    %287 = vector.broadcast %cst_43 : f32 to vector<8x128xf32>
    %288 = arith.addf %287, %286 : vector<8x128xf32>
    %289 = arith.divf %287, %288 : vector<8x128xf32>
    %290 = math.tanh %284 : vector<8x128xf32>
    %291 = vector.extract_strided_slice %289 {offsets = [0, 0], sizes = [8, 32], strides = [1, 1]} : vector<8x128xf32> to vector<8x32xf32>
    %292 = vector.extract_strided_slice %289 {offsets = [0, 32], sizes = [8, 32], strides = [1, 1]} : vector<8x128xf32> to vector<8x32xf32>
    %293 = vector.extract_strided_slice %290 {offsets = [0, 64], sizes = [8, 32], strides = [1, 1]} : vector<8x128xf32> to vector<8x32xf32>
    %294 = vector.extract_strided_slice %289 {offsets = [0, 96], sizes = [8, 32], strides = [1, 1]} : vector<8x128xf32> to vector<8x32xf32>
    %295 = arith.mulf %292, %261 : vector<8x32xf32>
    %296 = arith.mulf %291, %293 : vector<8x32xf32>
    %297 = arith.addf %295, %296 : vector<8x32xf32>
    %298 = math.tanh %297 : vector<8x32xf32>
    %299 = arith.mulf %294, %298 : vector<8x32xf32>
    %c0_44 = arith.constant 0 : index
    %c0_45 = arith.constant 0 : index
    %300 = vector.load %arg9[%c0_44, %c0_45] : memref<8x32xf32, #tpu.memory_space<vmem>>, vector<8x32xf32>
    tpu.vector_store %arg9[%c0_44, %c0_45], %299 {strides = array<i32>} : memref<8x32xf32, #tpu.memory_space<vmem>>, vector<8x32xf32>,
    %c0_46 = arith.constant 0 : index
    %c0_47 = arith.constant 0 : index
    %301 = vector.load %arg6[%c0_46, %c0_47] : memref<1x32xf32, #tpu.memory_space<vmem>>, vector<1x32xf32>
    %302 = vector.broadcast %301 : vector<1x32xf32> to vector<8x32xf32>
    %303 = arith.mulf %299, %302 : vector<8x32xf32>
    %cst_48 = arith.constant dense<0.000000e+00> : vector<8xf32>
    %304 = vector.multi_reduction <add>, %303, %cst_48 [1] : vector<8x32xf32> to vector<8xf32>
    %305 = vector.shape_cast %304 : vector<8xf32> to vector<8x1xf32>
    %c0_49 = arith.constant 0 : index
    %c0_50 = arith.constant 0 : index
    %306 = vector.load %arg7[%c0_49, %c0_50] : memref<1x1xf32, #tpu.memory_space<vmem>>, vector<1x1xf32>
    %307 = vector.broadcast %306 : vector<1x1xf32> to vector<8x1xf32>
    %308 = arith.addf %305, %307 : vector<8x1xf32>
    %c0_51 = arith.constant 0 : index
    %c0_52 = arith.constant 0 : index
    %309 = vector.load %arg8[%c0_51, %c0_52] : memref<8x1xf32, #tpu.memory_space<vmem>>, vector<8x1xf32>
    tpu.vector_store %arg8[%c0_51, %c0_52], %308 {strides = array<i32>} : memref<8x1xf32, #tpu.memory_space<vmem>>, vector<8x1xf32>,
    return
  }
}

</mosaic_0001>

<bundles_post_ra>
// kernel: tpu_custom_call.1
= control target key start
LH: loop header
LB: loop body
LE: loop exit
PB: predicated region body
PF: predicated region fallthrough
CT: control target
= control target key end

     0   :  { %s1905_s0 = inlined_call_operand.vmem [shape: f32[64,20], index: 0, kind: input, shape index: {}]   ;;  %s1906_s1 = inlined_call_operand.vmem [shape: f32[20,128], index: 1, kind: input, shape index: {}]   ;;  %s1907_s2 = inlined_call_operand.hbm [shape: f32[32,128], index: 2, kind: input, shape index: {}]   ;;  %s1908_s3 = inlined_call_operand.vmem [shape: f32[1,128], index: 3, kind: input, shape index: {}]   ;;  %s1909_s4 = inlined_call_operand.vmem [shape: f32[64,128], index: 4, kind: input, shape index: {}]   ;;  %s1910_s5 = inlined_call_operand.vmem [shape: f32[1,128], index: 5, kind: input, shape index: {}]   ;;  %s1911_s6 = inlined_call_operand.vmem [shape: f32[1,32], index: 6, kind: input, shape index: {}]   ;;  %s1912_s7 = inlined_call_operand.<no memory space> [shape: f32[1,1], index: 7, kind: input, shape index: {}]   ;;  %s1913_s8 = inlined_call_operand.vmem [shape: f32[8,1], index: 8, kind: output, shape index: {0}]   ;;  %s1914_s9 = inlined_call_operand.hbm [shape: f32[8,32], index: 9, kind: output, shape index: {1}]  }
   0x1   :  { %v15_v0 = vstv %s1912_s7 }
   0x2   :  { %16 = vst [vmem:[#allocation2] sm:$0x1] %v15_v0 }
   0x3   :  { %17 = vsyncpa [#allocation4], 0 }
   0x4   :  { %18 = vsyncpa [#allocation5], 0  ;;  %s27_s13 = sshll.u32 %s1907_s2, 4  ;;  %s1466_s14 = smov [#allocation3]   ;;  %s28_s13 = int_to_ptr.hbm [resolvable:$true] %s27_s13 }
   0x5   :  { %s29_s15 = sshll.u32 %s1466_s14, 4  ;;  %s1467_s16 = smov 128   ;;  %s30_s15 = int_to_ptr.vmem [resolvable:$true] %s29_s15 }
   0x6   :  { %s1468_s17 = smov 8  }
   0x7   :  { %35 = dma.hbm_to_vmem [thread:$0]  %s28_s13, 512, %s30_s15, [#allocation4], %s1467_s16, %s1467_s16, %s1468_s17  }
   0x8   :  { %1462 = dma.done.wait [#allocation4], 512  }
   0x9   :  { %1463 = vsyncadd [#allocation4], 4294966784  ;;  %vm90_vm0 = vcmask 1043456   ;;  %v60_v1 = vld [vmem:[%s1906_s1 + $0x10] sm:$0xf]  ;;  %v59_v2 = vld [vmem:[%s1906_s1 + $0x8] sm:$0xff] }
   0xa   :  { %1269 = vmatpush.msk.msra.mxu1 %vm90_vm0, %v60_v1  ;;  %v1536_v3 = vld [vmem:[#allocation3 + $0x18] sm:$0xff]  ;;  %1229 = vmatpush.msk.msra.mxu0 %vm90_vm0, %v60_v1  ;;  %v1544_v6 = vld [vmem:[#allocation3 + $0x10] sm:$0xff]  ;;  %vm65_vm1 = vcmask 162816   ;;  %v1552_v8 = vld [vmem:[#allocation3 + $0x8] sm:$0xff]  ;;  %v1469_v10 = vmov 0.0   ;;  %s1470_s27 = smov 64  }
   0xb   :  { %v58_v4 = vld [vmem:[%s1906_s1] sm:$0xff]  ;;  %v57_v5 = vld [vmem:[%s1905_s0 + $0x38] sm:$0xff]  ;;  %293 = vmatpush.msra.mxu3 %v1536_v3  ;;  %s1471_s28 = smov 32   ;;  %v1589_v38 = vld [vmem:[%s1909_s4 + $0x30] sm:$0xff]  ;;  %vm151_vm6 = vcmask 261120   ;;  %vm218_vm7 = vcmask 523264  }
   0xc   :  { %1270 = vmatpush.msra.mxu1 %v59_v2  ;;  %108 = vmatpush.msra.mxu0 %v59_v2  ;;  %v50_v7 = vld [vmem:[%s1905_s0] sm:$0xff]  ;;  %v1584_v37 = vld [vmem:[%s1909_s4 + $0x38] sm:$0xff]  ;;  %v1596_v39 = vld [vmem:[%s1909_s4 + $0x28] sm:$0xff]  ;;  %s1472_s18 = smov 96   ;;  %s1217_s2 = sshll.u32 %s1914_s9, 4  ;;  %s1218_s2 = int_to_ptr.hbm [resolvable:$true] %s1217_s2 }
   0xd   :  { %294 = vmatpush.msra.mxu3 %v1544_v6  ;;  %v1557_v9 = vld [vmem:[#allocation3] sm:$0xff]  ;;  %v1572_v13 = vld [vmem:[%s1908_s3] ss:$0 sm:$0xff]  ;;  %230 = vmatpush.msra.mxu2 %v1584_v37  ;;  %v1612_v41 = vld [vmem:[%s1909_s4 + $0x18] sm:$0xff] }
   0xe   :  { %1271 = vmatpush.msra.mxu1 %v58_v4  ;;  %109 = vmatpush.msra.mxu0 %v58_v4  ;;  %v1604_v40 = vld [vmem:[%s1909_s4 + $0x20] sm:$0xff]  ;;  %v1620_v42 = vld [vmem:[%s1909_s4 + $0x10] sm:$0xff]  ;;  %v1628_v43 = vld [vmem:[%s1909_s4 + $0x8] sm:$0xff] }
   0xf   :  { %1237 = vmatmul.msk.f32.vlgmr.msra.gmra.mxu1 %vm65_vm1, %v57_v5  ;;  %1230 = vmatmul.msk.f32.vlgmr.msra.gmra.mxu0 %vm65_vm1, %v50_v7  ;;  %v1641_v46 = vld [vmem:[%s1909_s4] sm:$0xff]  ;;  %v51_v47 = vld [vmem:[%s1905_s0 + $0x8] sm:$0xff] }
  0x10   :  { %167 = vmatpush.msrb.mxu1 %v1536_v3  ;;  %295 = vmatpush.msra.mxu3 %v1552_v8  ;;  %v1685_v54 = vld [vmem:[%s1910_s5] ss:$0 sm:$0xff] }
  0x11   :  { %1133 = vmatpush.msrb.mxu0 %v1584_v37  ;;  %231 = vmatpush.msra.mxu2 %v1589_v38 }
  0x12   :  { %168 = vmatpush.msrb.mxu1 %v1544_v6  ;;  %296 = vmatpush.msra.mxu3 %v1557_v9 }
  0x13   :  { %1134 = vmatpush.msrb.mxu0 %v1589_v38  ;;  %232 = vmatpush.msra.mxu2 %v1596_v39 }
  0x14   :  { %422 = vmatpush.msrb.mxu3 %v1536_v3  ;;  %169 = vmatpush.msrb.mxu1 %v1552_v8 }
  0x15   :  { %1135 = vmatpush.msrb.mxu0 %v1596_v39  ;;  %233 = vmatpush.msra.mxu2 %v1604_v40 }
  0x16   :  { %423 = vmatpush.msrb.mxu3 %v1544_v6  ;;  %170 = vmatpush.msrb.mxu1 %v1557_v9 }
  0x17   :  { %171 = vmatmul.f32.vlgmr.msrb.gmra.mxu1 %v1469_v10  ;;  %1136 = vmatpush.msrb.mxu0 %v1604_v40 }
  0x18   :  { %424 = vmatpush.msrb.mxu3 %v1552_v8  ;;  %359 = vmatpush.msra.mxu1 %v1584_v37 }
  0x19   :  { %234 = vmatpush.msra.mxu2 %v1612_v41  ;;  %1137 = vmatpush.msrb.mxu0 %v1612_v41 }
  0x1a   :  { %425 = vmatpush.msrb.mxu3 %v1557_v9  ;;  %360 = vmatpush.msra.mxu1 %v1589_v38 }
  0x1b   :  { %235 = vmatpush.msra.mxu2 %v1620_v42  ;;  %1138 = vmatpush.msrb.mxu0 %v1620_v42 }
  0x1c   :  { %361 = vmatpush.msra.mxu1 %v1596_v39  ;;  %1231 = vmatmul.msk.f32.gmra.mxu0 %vm65_vm1, %v51_v47 }
  0x1d   :  { %236 = vmatpush.msra.mxu2 %v1628_v43  ;;  %1139 = vmatpush.msrb.mxu0 %v1628_v43 }
  0x1e   :  { %362 = vmatpush.msra.mxu1 %v1604_v40 }
  0x1f   :  { %237 = vmatpush.msra.mxu2 %v1641_v46  ;;  %1140 = vmatpush.msrb.mxu0 %v1641_v46 }
  0x20   :  { %363 = vmatpush.msra.mxu1 %v1612_v41 }
  0x21   :  { %488 = vmatpush.msrb.mxu2 %v1584_v37 }
  0x22   :  { %364 = vmatpush.msra.mxu1 %v1620_v42 }
  0x23   :  { %489 = vmatpush.msrb.mxu2 %v1589_v38 }
  0x24   :  { %365 = vmatpush.msra.mxu1 %v1628_v43 }
  0x25   :  { %490 = vmatpush.msrb.mxu2 %v1596_v39 }
  0x26   :  { %366 = vmatpush.msra.mxu1 %v1641_v46 }
  0x27   :  { %491 = vmatpush.msrb.mxu2 %v1604_v40 }
  0x28   :  { %617 = vmatpush.msrb.mxu1 %v1584_v37 }
  0x29   :  { %492 = vmatpush.msrb.mxu2 %v1612_v41 }
  0x2a   :  { %618 = vmatpush.msrb.mxu1 %v1589_v38 }
  0x2b   :  { %493 = vmatpush.msrb.mxu2 %v1620_v42 }
  0x2c   :  { %619 = vmatpush.msrb.mxu1 %v1596_v39 }
  0x2d   :  { %494 = vmatpush.msrb.mxu2 %v1628_v43 }
  0x2e   :  { %620 = vmatpush.msrb.mxu1 %v1604_v40 }
  0x2f   :  { %495 = vmatpush.msrb.mxu2 %v1641_v46 }
  0x30   :  { %621 = vmatpush.msrb.mxu1 %v1612_v41 }
  0x32   :  { %622 = vmatpush.msrb.mxu1 %v1620_v42 }
  0x34   :  { %623 = vmatpush.msrb.mxu1 %v1628_v43 }
  0x36   :  { %624 = vmatpush.msrb.mxu1 %v1641_v46 }
  0x8c   :  { %v1567_v11 = vpop.f32.mrf.mxu1  ;;  %v111_v12 = vpop.f32.mrf.mxu0 }
  0x8d   :  { %v112_v14 = vadd.f32 %v1572_v13, %v111_v12 }
  0x94   :  { %v172_v15 = vpop.f32.mrf.mxu1 }
  0x95   :  { %v175_v16 = vadd.f32 %v172_v15, %v112_v14 }
  0x97   :  { %1284 = vtanh.f32 %v175_v16  ;;  %v1238_v18 = vmul.f32 -1.442695, %v175_v16 }
  0x99   :  { %1286 = vpow2.f32 %v1238_v18  ;;  %v114_v50 = vpop.f32.mrf.mxu0 }
  0x9a   :  { %v115_v51 = vadd.f32 %v1572_v13, %v114_v50 }
  0x9d   :  { %v1285_v17 = vpop.eup %1284 }
  0x9e   :  { %198 = vrot.lane.b32.xlu0 %v1285_v17, %s1470_s27 }
  0x9f   :  { %v1287_v19 = vpop.eup %1286 }
  0xa0   :  { %v179_v20 = vadd.f32 1.0, %v1287_v19 }
  0xa2   :  { %1288 = vrcp.f32 %v179_v20  ;;  %v191_v26 = vand.u32 2147483648, %v179_v20  ;;  %vm185_vm3 = vweird.f32 %v179_v20  ;;  %v189_v27 = vand.u32 2147483647, %v179_v20 }
  0xa4   :  { %v192_v29 = vor.u32 1.1754944e-38, %v191_v26  ;;  %vm190_vm5 = vcmp.eq.f32.partialorder %v189_v27, 8.507059e+37 }
  0xa8   :  { %v1289_v21 = vpop.eup %1288 }
  0xa9   :  { %v181_v22 = vmul.f32 %v1289_v21, %v179_v20  ;;  %vm186_vm2 = vweird.f32 %v1289_v21 }
  0xaa   :  { %vm187_vm4 = vmor %vm185_vm3, %vm186_vm2 }
  0xab   :  { %v182_v23 = vsub.f32 1.0, %v181_v22 }
  0xad   :  { %v183_v24 = vmul.f32 %v1289_v21, %v182_v23 }
  0xaf   :  { %v184_v25 = vadd.f32 %v1289_v21, %v183_v24 }
  0xb1   :  { %v188_v28 = vsel %vm187_vm4, %v1289_v21, %v184_v25 }
  0xb2   :  { %v193_v31 = vsel %vm190_vm5, %v192_v29, %v188_v28 }
  0xb3   :  { %v196_v33 = vmul.f32 0.0, %v193_v31 }
 0x110   :  { %v199_v30 = vpop.permute.xlu0 %198 }
 0x111   :  { %v201_v32 = vmul.f32 %v199_v30, %v193_v31 }
 0x113   :  { %203 = vrot.lane.b32.xlu0 %v201_v32, %s1471_s28 }
 0x185   :  { %v204_v34 = vpop.permute.xlu0 %203 }
 0x186   :  { %v1577_v35 = vadd.f32 %v204_v34, %v196_v33 }
 0x188   :  { %1290 = vtanh.f32 %v1577_v35 }
 0x18e   :  { %v1291_v36 = vpop.eup %1290 }
 0x18f   :  { %209 = vrot.lane.b32.xlu1 %v1291_v36, %s1470_s27 }
 0x201   :  { %v210_v44 = vpop.permute.xlu1 %209 }
 0x202   :  { %v212_v45 = vmul.f32 %v210_v44, %v193_v31 }
 0x204   :  { %214 = vrot.lane.b32.xlu1 %v212_v45, %s1471_s28 }
 0x276   :  { %v215_v48 = vpop.permute.xlu1 %214 }
 0x277   :  { %1241 = vmatmul.msk.f32.vlgmr.msra.gmra.mxu3 %vm151_vm6, %v215_v48  ;;  %v217_v49 = vsel %vm151_vm6, %v215_v48, 0.0 }
 0x278   :  { %1239 = vmatmul.msk.f32.vlgmr.msra.gmra.mxu2 %vm218_vm7, %v217_v49  ;;  %551 = vmatpush.msra.mxu3 %v1536_v3 }
 0x279   :  { %746 = vmatpush.msra.mxu2 %v1584_v37 }
 0x27a   :  { %552 = vmatpush.msra.mxu3 %v1544_v6 }
 0x27b   :  { %747 = vmatpush.msra.mxu2 %v1589_v38 }
 0x27c   :  { %553 = vmatpush.msra.mxu3 %v1552_v8 }
 0x27d   :  { %748 = vmatpush.msra.mxu2 %v1596_v39 }
 0x27e   :  { %554 = vmatpush.msra.mxu3 %v1557_v9 }
 0x27f   :  { %749 = vmatpush.msra.mxu2 %v1604_v40 }
 0x281   :  { %750 = vmatpush.msra.mxu2 %v1612_v41 }
 0x283   :  { %751 = vmatpush.msra.mxu2 %v1620_v42 }
 0x285   :  { %752 = vmatpush.msra.mxu2 %v1628_v43 }
 0x287   :  { %753 = vmatpush.msra.mxu2 %v1641_v46 }
 0x2fa   :  { %v298_v52 = vpop.f32.mrf.mxu3 }
 0x2fb   :  { %v301_v53 = vadd.f32 %v298_v52, %v115_v51  ;;  %v239_v55 = vpop.f32.mrf.mxu2  ;;  %v52_v51 = vld [vmem:[%s1905_s0 + $0x10] sm:$0xff] }
 0x2fc   :  { %v240_v56 = vadd.f32 %v1685_v54, %v239_v55  ;;  %1232 = vmatmul.msk.f32.gmra.mxu0 %vm65_vm1, %v52_v51 }
 0x2fd   :  { %1292 = vtanh.f32 %v301_v53  ;;  %v1242_v59 = vmul.f32 -1.442695, %v301_v53 }
 0x2fe   :  { %1294 = vtanh.f32 %v240_v56  ;;  %v1240_v60 = vmul.f32 -1.442695, %v240_v56 }
 0x2ff   :  { %1296 = vpow2.f32 %v1242_v59 }
 0x300   :  { %1298 = vpow2.f32 %v1240_v60 }
 0x303   :  { %v1293_v57 = vpop.eup %1292 }
 0x304   :  { %324 = vrot.lane.b32.xlu2 %v1293_v57, %s1470_s27  ;;  %v1295_v58 = vpop.eup %1294 }
 0x305   :  { %v1297_v61 = vpop.eup %1296 }
 0x306   :  { %v305_v62 = vadd.f32 1.0, %v1297_v61  ;;  %v1299_v63 = vpop.eup %1298 }
 0x307   :  { %v245_v0 = vadd.f32 1.0, %v1299_v63 }
 0x308   :  { %1300 = vrcp.f32 %v305_v62  ;;  %v317_v15 = vand.u32 2147483648, %v305_v62  ;;  %vm311_vm9 = vweird.f32 %v305_v62  ;;  %v315_v16 = vand.u32 2147483647, %v305_v62 }
 0x309   :  { %1302 = vrcp.f32 %v245_v0  ;;  %v257_v24 = vand.u32 2147483648, %v245_v0  ;;  %vm251_vm13 = vweird.f32 %v245_v0  ;;  %v255_v25 = vand.u32 2147483647, %v245_v0 }
 0x30a   :  { %v318_v19 = vor.u32 1.1754944e-38, %v317_v15  ;;  %vm316_vm11 = vcmp.eq.f32.partialorder %v315_v16, 8.507059e+37 }
 0x30b   :  { %v258_v27 = vor.u32 1.1754944e-38, %v257_v24  ;;  %vm256_vm15 = vcmp.eq.f32.partialorder %v255_v25, 8.507059e+37 }
 0x30c   :  { %264 = vrot.lane.b32.xlu2 %v1295_v58, %s1470_s27 }
 0x30e   :  { %v1301_v1 = vpop.eup %1300 }
 0x30f   :  { %v307_v2 = vmul.f32 %v1301_v1, %v305_v62  ;;  %v1303_v5 = vpop.eup %1302  ;;  %vm312_vm8 = vweird.f32 %v1301_v1 }
 0x310   :  { %v247_v10 = vmul.f32 %v1303_v5, %v245_v0  ;;  %vm313_vm10 = vmor %vm311_vm9, %vm312_vm8  ;;  %vm252_vm12 = vweird.f32 %v1303_v5 }
 0x311   :  { %v308_v4 = vsub.f32 1.0, %v307_v2  ;;  %vm253_vm14 = vmor %vm251_vm13, %vm252_vm12 }
 0x312   :  { %v248_v14 = vsub.f32 1.0, %v247_v10 }
 0x313   :  { %v309_v7 = vmul.f32 %v1301_v1, %v308_v4 }
 0x314   :  { %v249_v18 = vmul.f32 %v1303_v5, %v248_v14 }
 0x315   :  { %v310_v12 = vadd.f32 %v1301_v1, %v309_v7 }
 0x316   :  { %v250_v23 = vadd.f32 %v1303_v5, %v249_v18 }
 0x317   :  { %v314_v17 = vsel %vm313_vm10, %v1301_v1, %v310_v12 }
 0x318   :  { %v319_v21 = vsel %vm316_vm11, %v318_v19, %v314_v17  ;;  %v254_v26 = vsel %vm253_vm14, %v1303_v5, %v250_v23 }
 0x319   :  { %v259_v29 = vsel %vm256_vm15, %v258_v27, %v254_v26  ;;  %v322_v31 = vmul.f32 %v319_v21, %v1577_v35 }
 0x31a   :  { %v262_v34 = vmul.f32 0.0, %v259_v29 }
 0x35e   :  { %v325_v20 = vpop.permute.xlu2 %324 }
 0x35f   :  { %v327_v22 = vmul.f32 %v325_v20, %v319_v21 }
 0x361   :  { %329 = vrot.lane.b32.xlu0 %v327_v22, %s1471_s28 }
 0x366   :  { %v265_v28 = vpop.permute.xlu2 %264 }
 0x367   :  { %v267_v30 = vmul.f32 %v265_v28, %v259_v29 }
 0x369   :  { %269 = vrot.lane.b32.xlu1 %v267_v30, %s1471_s28 }
 0x379   :  { %v117_v56 = vpop.f32.mrf.mxu0 }
 0x37a   :  { %v118_v57 = vadd.f32 %v1572_v13, %v117_v56 }
 0x3d3   :  { %v330_v32 = vpop.permute.xlu0 %329 }
 0x3d4   :  { %v1693_v33 = vadd.f32 %v330_v32, %v322_v31 }
 0x3d6   :  { %1304 = vtanh.f32 %v1693_v33 }
 0x3db   :  { %v270_v36 = vpop.permute.xlu1 %269 }
 0x3dc   :  { %v1305_v44 = vpop.eup %1304  ;;  %v1696_v45 = vadd.f32 %v270_v36, %v262_v34 }
 0x3dd   :  { %335 = vrot.lane.b32.xlu2 %v1305_v44, %s1470_s27 }
 0x3de   :  { %1306 = vtanh.f32 %v1696_v45 }
 0x3e4   :  { %v1307_v47 = vpop.eup %1306 }
 0x3e5   :  { %275 = vrot.lane.b32.xlu0 %v1307_v47, %s1470_s27 }
 0x437   :  { %v336_v48 = vpop.permute.xlu2 %335 }
 0x438   :  { %v338_v49 = vmul.f32 %v336_v48, %v319_v21 }
 0x43a   :  { %340 = vrot.lane.b32.xlu1 %v338_v49, %s1471_s28 }
 0x457   :  { %v276_v35 = vpop.permute.xlu0 %275 }
 0x458   :  { %v278_v50 = vmul.f32 %v276_v35, %v259_v29 }
 0x45a   :  { %344 = vrot.lane.b32.xlu2 %v278_v50, %s1470_s27 }
 0x4ac   :  { %v341_v52 = vpop.permute.xlu1 %340 }
 0x4ad   :  { %1245 = vmatmul.msk.f32.vlgmr.msrb.gmra.mxu3 %vm151_vm6, %v341_v52 }
 0x4ae   :  { %680 = vmatpush.msrb.mxu3 %v1536_v3 }
 0x4b0   :  { %681 = vmatpush.msrb.mxu3 %v1544_v6 }
 0x4b2   :  { %682 = vmatpush.msrb.mxu3 %v1552_v8 }
 0x4b4   :  { %v345_v53 = vpop.permute.xlu2 %344  ;;  %683 = vmatpush.msrb.mxu3 %v1557_v9 }
 0x4b5   :  { %v347_v55 = vsel %vm151_vm6, %v341_v52, %v345_v53 }
 0x4b6   :  { %1243 = vmatmul.msk.f32.vlgmr.msra.gmra.mxu1 %vm218_vm7, %v347_v55 }
 0x4b7   :  { %875 = vmatpush.msra.mxu1 %v1584_v37 }
 0x4b9   :  { %876 = vmatpush.msra.mxu1 %v1589_v38 }
 0x4bb   :  { %877 = vmatpush.msra.mxu1 %v1596_v39 }
 0x4bd   :  { %878 = vmatpush.msra.mxu1 %v1604_v40 }
 0x4bf   :  { %879 = vmatpush.msra.mxu1 %v1612_v41 }
 0x4c1   :  { %880 = vmatpush.msra.mxu1 %v1620_v42 }
 0x4c3   :  { %881 = vmatpush.msra.mxu1 %v1628_v43 }
 0x4c5   :  { %882 = vmatpush.msra.mxu1 %v1641_v46 }
 0x530   :  { %v427_v58 = vpop.f32.mrf.mxu3 }
 0x531   :  { %v430_v59 = vadd.f32 %v427_v58, %v118_v57 }
 0x533   :  { %1308 = vtanh.f32 %v430_v59  ;;  %v368_v60 = vpop.f32.mrf.mxu1  ;;  %v1246_v0 = vmul.f32 -1.442695, %v430_v59 }
 0x534   :  { %v369_v61 = vadd.f32 %v1685_v54, %v368_v60 }
 0x536   :  { %1310 = vtanh.f32 %v369_v61  ;;  %v1244_v1 = vmul.f32 -1.442695, %v369_v61 }
 0x537   :  { %1312 = vpow2.f32 %v1246_v0 }
 0x538   :  { %1314 = vpow2.f32 %v1244_v1 }
 0x539   :  { %v1309_v62 = vpop.eup %1308 }
 0x53a   :  { %453 = vrot.lane.b32.xlu0 %v1309_v62, %s1470_s27 }
 0x53c   :  { %v1311_v63 = vpop.eup %1310 }
 0x53d   :  { %393 = vrot.lane.b32.xlu1 %v1311_v63, %s1470_s27  ;;  %v1313_v2 = vpop.eup %1312 }
 0x53e   :  { %v1315_v4 = vpop.eup %1314  ;;  %v434_v5 = vadd.f32 1.0, %v1313_v2 }
 0x53f   :  { %v374_v7 = vadd.f32 1.0, %v1315_v4 }
 0x540   :  { %1316 = vrcp.f32 %v434_v5  ;;  %v446_v21 = vand.u32 2147483648, %v434_v5  ;;  %vm440_vm2 = vweird.f32 %v434_v5  ;;  %v444_v22 = vand.u32 2147483647, %v434_v5 }
 0x541   :  { %1318 = vrcp.f32 %v374_v7  ;;  %v386_v25 = vand.u32 2147483648, %v374_v7  ;;  %vm380_vm5 = vweird.f32 %v374_v7  ;;  %v384_v27 = vand.u32 2147483647, %v374_v7 }
 0x542   :  { %v447_v26 = vor.u32 1.1754944e-38, %v446_v21  ;;  %vm445_vm8 = vcmp.eq.f32.partialorder %v444_v22, 8.507059e+37 }
 0x543   :  { %v387_v32 = vor.u32 1.1754944e-38, %v386_v25  ;;  %vm385_vm10 = vcmp.eq.f32.partialorder %v384_v27, 8.507059e+37 }
 0x546   :  { %v1317_v10 = vpop.eup %1316 }
 0x547   :  { %v1319_v12 = vpop.eup %1318  ;;  %v436_v14 = vmul.f32 %v1317_v10, %v434_v5  ;;  %vm441_vm0 = vweird.f32 %v1317_v10 }
 0x548   :  { %v376_v15 = vmul.f32 %v1319_v12, %v374_v7  ;;  %vm442_vm3 = vmor %vm440_vm2, %vm441_vm0  ;;  %vm381_vm4 = vweird.f32 %v1319_v12 }
 0x549   :  { %v437_v16 = vsub.f32 1.0, %v436_v14  ;;  %vm382_vm9 = vmor %vm380_vm5, %vm381_vm4 }
 0x54a   :  { %v377_v17 = vsub.f32 1.0, %v376_v15 }
 0x54b   :  { %v438_v18 = vmul.f32 %v1317_v10, %v437_v16 }
 0x54c   :  { %v378_v19 = vmul.f32 %v1319_v12, %v377_v17 }
 0x54d   :  { %v439_v20 = vadd.f32 %v1317_v10, %v438_v18 }
 0x54e   :  { %v379_v23 = vadd.f32 %v1319_v12, %v378_v19 }
 0x54f   :  { %v443_v24 = vsel %vm442_vm3, %v1317_v10, %v439_v20 }
 0x550   :  { %v448_v28 = vsel %vm445_vm8, %v447_v26, %v443_v24  ;;  %v383_v30 = vsel %vm382_vm9, %v1319_v12, %v379_v23 }
 0x551   :  { %v388_v36 = vsel %vm385_vm10, %v387_v32, %v383_v30  ;;  %v451_v47 = vmul.f32 %v448_v28, %v1693_v33 }
 0x552   :  { %v391_v50 = vmul.f32 %v388_v36, %v1696_v45  ;;  %v53_v45 = vld [vmem:[%s1905_s0 + $0x18] sm:$0xff] }
 0x553   :  { %1233 = vmatmul.msk.f32.gmra.mxu0 %vm65_vm1, %v53_v45 }
 0x5ac   :  { %v454_v29 = vpop.permute.xlu0 %453 }
 0x5ad   :  { %v456_v31 = vmul.f32 %v454_v29, %v448_v28 }
 0x5af   :  { %v394_v34 = vpop.permute.xlu1 %393  ;;  %458 = vrot.lane.b32.xlu2 %v456_v31, %s1471_s28 }
 0x5b0   :  { %v396_v44 = vmul.f32 %v394_v34, %v388_v36 }
 0x5b2   :  { %398 = vrot.lane.b32.xlu0 %v396_v44, %s1471_s28 }
 0x5d0   :  { %v120_v61 = vpop.f32.mrf.mxu0 }
 0x5d1   :  { %v121_v62 = vadd.f32 %v1572_v13, %v120_v61 }
 0x609   :  { %v459_v48 = vpop.permute.xlu2 %458 }
 0x60a   :  { %v1729_v49 = vadd.f32 %v459_v48, %v451_v47 }
 0x60c   :  { %1320 = vtanh.f32 %v1729_v49 }
 0x612   :  { %v1321_v35 = vpop.eup %1320 }
 0x613   :  { %464 = vrot.lane.b32.xlu1 %v1321_v35, %s1470_s27 }
 0x624   :  { %v399_v51 = vpop.permute.xlu0 %398 }
 0x625   :  { %v1734_v52 = vadd.f32 %v399_v51, %v391_v50 }
 0x627   :  { %1322 = vtanh.f32 %v1734_v52 }
 0x62d   :  { %v1323_v53 = vpop.eup %1322 }
 0x62e   :  { %404 = vrot.lane.b32.xlu2 %v1323_v53, %s1470_s27 }
 0x685   :  { %v465_v55 = vpop.permute.xlu1 %464 }
 0x686   :  { %v467_v33 = vmul.f32 %v465_v55, %v448_v28 }
 0x688   :  { %469 = vrot.lane.b32.xlu0 %v467_v33, %s1471_s28  ;;  %v405_v56 = vpop.permute.xlu2 %404 }
 0x689   :  { %v407_v57 = vmul.f32 %v405_v56, %v388_v36 }
 0x68b   :  { %473 = vrot.lane.b32.xlu1 %v407_v57, %s1470_s27 }
 0x6fa   :  { %v470_v58 = vpop.permute.xlu0 %469 }
 0x6fb   :  { %1249 = vmatmul.msk.f32.vlgmr.msra.gmra.mxu3 %vm151_vm6, %v470_v58 }
 0x6fc   :  { %809 = vmatpush.msra.mxu3 %v1536_v3 }
 0x6fd   :  { %v474_v59 = vpop.permute.xlu1 %473 }
 0x6fe   :  { %v476_v60 = vsel %vm151_vm6, %v470_v58, %v474_v59  ;;  %810 = vmatpush.msra.mxu3 %v1544_v6 }
 0x6ff   :  { %1247 = vmatmul.msk.f32.vlgmr.msrb.gmra.mxu2 %vm218_vm7, %v476_v60 }
 0x700   :  { %811 = vmatpush.msra.mxu3 %v1552_v8  ;;  %1004 = vmatpush.msrb.mxu2 %v1584_v37 }
 0x702   :  { %812 = vmatpush.msra.mxu3 %v1557_v9  ;;  %1005 = vmatpush.msrb.mxu2 %v1589_v38 }
 0x704   :  { %1006 = vmatpush.msrb.mxu2 %v1596_v39 }
 0x706   :  { %1007 = vmatpush.msrb.mxu2 %v1604_v40 }
 0x708   :  { %1008 = vmatpush.msrb.mxu2 %v1612_v41 }
 0x70a   :  { %1009 = vmatpush.msrb.mxu2 %v1620_v42 }
 0x70c   :  { %1010 = vmatpush.msrb.mxu2 %v1628_v43 }
 0x70e   :  { %1011 = vmatpush.msrb.mxu2 %v1641_v46 }
 0x77e   :  { %v556_v37 = vpop.f32.mrf.mxu3 }
 0x77f   :  { %v559_v63 = vadd.f32 %v556_v37, %v121_v62 }
 0x781   :  { %1324 = vtanh.f32 %v559_v63  ;;  %v1250_v41 = vmul.f32 -1.442695, %v559_v63 }
 0x782   :  { %v497_v0 = vpop.f32.mrf.mxu2 }
 0x783   :  { %v498_v38 = vadd.f32 %v1685_v54, %v497_v0 }
 0x785   :  { %1326 = vtanh.f32 %v498_v38  ;;  %v1248_v2 = vmul.f32 -1.442695, %v498_v38 }
 0x786   :  { %1328 = vpow2.f32 %v1250_v41 }
 0x787   :  { %v1325_v39 = vpop.eup %1324 }
 0x788   :  { %582 = vrot.lane.b32.xlu2 %v1325_v39, %s1470_s27 }
 0x78b   :  { %v1327_v40 = vpop.eup %1326 }
 0x78c   :  { %522 = vrot.lane.b32.xlu0 %v1327_v40, %s1470_s27  ;;  %v1329_v42 = vpop.eup %1328 }
 0x78d   :  { %v563_v43 = vadd.f32 1.0, %v1329_v42 }
 0x78f   :  { %1330 = vrcp.f32 %v563_v43  ;;  %v575_v12 = vand.u32 2147483648, %v563_v43  ;;  %vm569_vm12 = vweird.f32 %v563_v43  ;;  %v573_v14 = vand.u32 2147483647, %v563_v43 }
 0x790   :  { %1332 = vpow2.f32 %v1248_v2 }
 0x791   :  { %v576_v17 = vor.u32 1.1754944e-38, %v575_v12  ;;  %vm574_vm14 = vcmp.eq.f32.partialorder %v573_v14, 8.507059e+37 }
 0x795   :  { %v1331_v46 = vpop.eup %1330 }
 0x796   :  { %v565_v1 = vmul.f32 %v1331_v46, %v563_v43  ;;  %v1333_v7 = vpop.eup %1332  ;;  %vm570_vm11 = vweird.f32 %v1331_v46 }
 0x797   :  { %v503_v15 = vadd.f32 1.0, %v1333_v7  ;;  %vm571_vm13 = vmor %vm569_vm12, %vm570_vm11 }
 0x798   :  { %v566_v4 = vsub.f32 1.0, %v565_v1 }
 0x799   :  { %1334 = vrcp.f32 %v503_v15  ;;  %v515_v26 = vand.u32 2147483648, %v503_v15  ;;  %vm509_vm0 = vweird.f32 %v503_v15  ;;  %v513_v27 = vand.u32 2147483647, %v503_v15 }
 0x79a   :  { %v567_v5 = vmul.f32 %v1331_v46, %v566_v4 }
 0x79b   :  { %v516_v29 = vor.u32 1.1754944e-38, %v515_v26  ;;  %vm514_vm3 = vcmp.eq.f32.partialorder %v513_v27, 8.507059e+37 }
 0x79c   :  { %v568_v10 = vadd.f32 %v1331_v46, %v567_v5 }
 0x79e   :  { %v572_v16 = vsel %vm571_vm13, %v1331_v46, %v568_v10 }
 0x79f   :  { %v577_v19 = vsel %vm574_vm14, %v576_v17, %v572_v16  ;;  %v1335_v21 = vpop.eup %1334 }
 0x7a0   :  { %v505_v22 = vmul.f32 %v1335_v21, %v503_v15  ;;  %vm510_vm15 = vweird.f32 %v1335_v21  ;;  %v580_v34 = vmul.f32 %v577_v19, %v1729_v49 }
 0x7a1   :  { %vm511_vm2 = vmor %vm509_vm0, %vm510_vm15 }
 0x7a2   :  { %v506_v23 = vsub.f32 1.0, %v505_v22 }
 0x7a4   :  { %v507_v24 = vmul.f32 %v1335_v21, %v506_v23 }
 0x7a6   :  { %v508_v25 = vadd.f32 %v1335_v21, %v507_v24 }
 0x7a8   :  { %v512_v28 = vsel %vm511_vm2, %v1335_v21, %v508_v25 }
 0x7a9   :  { %v517_v31 = vsel %vm514_vm3, %v516_v29, %v512_v28 }
 0x7aa   :  { %v520_v47 = vmul.f32 %v517_v31, %v1734_v52  ;;  %v54_v52 = vld [vmem:[%s1905_s0 + $0x20] sm:$0xff] }
 0x7ab   :  { %1234 = vmatmul.msk.f32.gmra.mxu0 %vm65_vm1, %v54_v52 }
 0x7e2   :  { %v583_v18 = vpop.permute.xlu2 %582 }
 0x7e3   :  { %v585_v20 = vmul.f32 %v583_v18, %v577_v19 }
 0x7e5   :  { %587 = vrot.lane.b32.xlu1 %v585_v20, %s1471_s28 }
 0x7fe   :  { %v523_v30 = vpop.permute.xlu0 %522 }
 0x7ff   :  { %v525_v32 = vmul.f32 %v523_v30, %v517_v31 }
 0x801   :  { %527 = vrot.lane.b32.xlu2 %v525_v32, %s1471_s28 }
 0x828   :  { %v123_v58 = vpop.f32.mrf.mxu0 }
 0x829   :  { %v124_v59 = vadd.f32 %v1572_v13, %v123_v58 }
 0x857   :  { %v588_v36 = vpop.permute.xlu1 %587 }
 0x858   :  { %v1766_v44 = vadd.f32 %v588_v36, %v580_v34 }
 0x85a   :  { %1336 = vtanh.f32 %v1766_v44 }
 0x85b   :  { %v528_v48 = vpop.permute.xlu2 %527 }
 0x85c   :  { %v1770_v35 = vadd.f32 %v528_v48, %v520_v47 }
 0x85e   :  { %1338 = vtanh.f32 %v1770_v35 }
 0x860   :  { %v1337_v50 = vpop.eup %1336 }
 0x861   :  { %593 = vrot.lane.b32.xlu0 %v1337_v50, %s1470_s27 }
 0x864   :  { %v1339_v51 = vpop.eup %1338 }
 0x865   :  { %533 = vrot.lane.b32.xlu1 %v1339_v51, %s1470_s27 }
 0x8d3   :  { %v594_v53 = vpop.permute.xlu0 %593 }
 0x8d4   :  { %v596_v49 = vmul.f32 %v594_v53, %v577_v19 }
 0x8d6   :  { %598 = vrot.lane.b32.xlu2 %v596_v49, %s1471_s28  ;;  %v55_v49 = vld [vmem:[%s1905_s0 + $0x28] sm:$0xff] }
 0x8d7   :  { %v534_v55 = vpop.permute.xlu1 %533  ;;  %1235 = vmatmul.msk.f32.gmra.mxu0 %vm65_vm1, %v55_v49 }
 0x8d8   :  { %v536_v33 = vmul.f32 %v534_v55, %v517_v31 }
 0x8da   :  { %602 = vrot.lane.b32.xlu0 %v536_v33, %s1470_s27 }
 0x930   :  { %v599_v56 = vpop.permute.xlu2 %598 }
 0x931   :  { %1253 = vmatmul.msk.f32.vlgmr.msrb.gmra.mxu3 %vm151_vm6, %v599_v56 }
 0x932   :  { %938 = vmatpush.msrb.mxu3 %v1536_v3 }
 0x934   :  { %939 = vmatpush.msrb.mxu3 %v1544_v6 }
 0x936   :  { %940 = vmatpush.msrb.mxu3 %v1552_v8 }
 0x938   :  { %941 = vmatpush.msrb.mxu3 %v1557_v9 }
 0x94c   :  { %v603_v57 = vpop.permute.xlu0 %602 }
 0x94d   :  { %v605_v45 = vsel %vm151_vm6, %v599_v56, %v603_v57 }
 0x94e   :  { %1251 = vmatmul.msk.f32.vlgmr.msrb.gmra.mxu1 %vm218_vm7, %v605_v45 }
 0x954   :  { %v126_v56 = vpop.f32.mrf.mxu0 }
 0x955   :  { %v127_v57 = vadd.f32 %v1572_v13, %v126_v56 }
 0x9b4   :  { %v685_v60 = vpop.f32.mrf.mxu3 }
 0x9b5   :  { %v688_v61 = vadd.f32 %v685_v60, %v124_v59 }
 0x9b7   :  { %1340 = vtanh.f32 %v688_v61  ;;  %v1254_v39 = vmul.f32 -1.442695, %v688_v61 }
 0x9bd   :  { %v1341_v62 = vpop.eup %1340 }
 0x9be   :  { %711 = vrot.lane.b32.xlu1 %v1341_v62, %s1470_s27 }
 0x9cb   :  { %v626_v37 = vpop.f32.mrf.mxu1 }
 0x9cc   :  { %v627_v63 = vadd.f32 %v1685_v54, %v626_v37 }
 0x9ce   :  { %1342 = vtanh.f32 %v627_v63  ;;  %v1252_v38 = vmul.f32 -1.442695, %v627_v63 }
 0x9d0   :  { %1344 = vpow2.f32 %v1252_v38 }
 0x9d1   :  { %1346 = vpow2.f32 %v1254_v39 }
 0x9d4   :  { %v1343_v0 = vpop.eup %1342 }
 0x9d5   :  { %651 = vrot.lane.b32.xlu2 %v1343_v0, %s1470_s27 }
 0x9d6   :  { %v1345_v40 = vpop.eup %1344 }
 0x9d7   :  { %v1347_v41 = vpop.eup %1346  ;;  %v632_v42 = vadd.f32 1.0, %v1345_v40 }
 0x9d8   :  { %v692_v43 = vadd.f32 1.0, %v1347_v41 }
 0x9d9   :  { %1348 = vrcp.f32 %v632_v42  ;;  %v644_v15 = vand.u32 2147483648, %v632_v42  ;;  %vm638_vm8 = vweird.f32 %v632_v42  ;;  %v642_v17 = vand.u32 2147483647, %v632_v42 }
 0x9da   :  { %1350 = vrcp.f32 %v692_v43  ;;  %v704_v18 = vand.u32 2147483648, %v692_v43  ;;  %vm698_vm10 = vweird.f32 %v692_v43  ;;  %v702_v19 = vand.u32 2147483647, %v692_v43 }
 0x9db   :  { %v645_v21 = vor.u32 1.1754944e-38, %v644_v15  ;;  %vm643_vm12 = vcmp.eq.f32.partialorder %v642_v17, 8.507059e+37 }
 0x9dc   :  { %v705_v23 = vor.u32 1.1754944e-38, %v704_v18  ;;  %vm703_vm13 = vcmp.eq.f32.partialorder %v702_v19, 8.507059e+37 }
 0x9df   :  { %v1349_v46 = vpop.eup %1348 }
 0x9e0   :  { %v1351_v1 = vpop.eup %1350  ;;  %v634_v2 = vmul.f32 %v1349_v46, %v632_v42  ;;  %vm639_vm4 = vweird.f32 %v1349_v46 }
 0x9e1   :  { %v694_v4 = vmul.f32 %v1351_v1, %v692_v43  ;;  %vm699_vm5 = vweird.f32 %v1351_v1  ;;  %vm640_vm9 = vmor %vm638_vm8, %vm639_vm4 }
 0x9e2   :  { %v635_v5 = vsub.f32 1.0, %v634_v2  ;;  %vm700_vm11 = vmor %vm698_vm10, %vm699_vm5 }
 0x9e3   :  { %v695_v7 = vsub.f32 1.0, %v694_v4 }
 0x9e4   :  { %v636_v10 = vmul.f32 %v1349_v46, %v635_v5 }
 0x9e5   :  { %v696_v12 = vmul.f32 %v1351_v1, %v695_v7 }
 0x9e6   :  { %v637_v14 = vadd.f32 %v1349_v46, %v636_v10 }
 0x9e7   :  { %v697_v16 = vadd.f32 %v1351_v1, %v696_v12 }
 0x9e8   :  { %v641_v20 = vsel %vm640_vm9, %v1349_v46, %v637_v14 }
 0x9e9   :  { %v701_v22 = vsel %vm700_vm11, %v1351_v1, %v697_v16  ;;  %v646_v25 = vsel %vm643_vm12, %v645_v21, %v641_v20 }
 0x9ea   :  { %v706_v27 = vsel %vm703_vm13, %v705_v23, %v701_v22  ;;  %v649_v30 = vmul.f32 %v646_v25, %v1770_v35 }
 0x9eb   :  { %v709_v32 = vmul.f32 %v706_v27, %v1766_v44 }
 0xa2f   :  { %v652_v24 = vpop.permute.xlu2 %651 }
 0xa30   :  { %v654_v26 = vmul.f32 %v652_v24, %v646_v25  ;;  %v712_v28 = vpop.permute.xlu1 %711 }
 0xa31   :  { %v714_v29 = vmul.f32 %v712_v28, %v706_v27 }
 0xa32   :  { %656 = vrot.lane.b32.xlu1 %v654_v26, %s1471_s28 }
 0xa33   :  { %716 = vrot.lane.b32.xlu0 %v714_v29, %s1471_s28 }
 0xaa4   :  { %v657_v31 = vpop.permute.xlu1 %656 }
 0xaa5   :  { %v1796_v34 = vadd.f32 %v657_v31, %v649_v30  ;;  %v717_v36 = vpop.permute.xlu0 %716 }
 0xaa6   :  { %v1798_v47 = vadd.f32 %v717_v36, %v709_v32 }
 0xaa7   :  { %1352 = vtanh.f32 %v1796_v34 }
 0xaa8   :  { %1354 = vtanh.f32 %v1798_v47 }
 0xaad   :  { %v1353_v48 = vpop.eup %1352 }
 0xaae   :  { %v1355_v50 = vpop.eup %1354  ;;  %662 = vrot.lane.b32.xlu0 %v1353_v48, %s1470_s27 }
 0xaaf   :  { %722 = vrot.lane.b32.xlu2 %v1355_v50, %s1470_s27 }
 0xb09   :  { %v723_v51 = vpop.permute.xlu2 %722 }
 0xb0a   :  { %v725_v35 = vmul.f32 %v723_v51, %v706_v27 }
 0xb0c   :  { %727 = vrot.lane.b32.xlu1 %v725_v35, %s1471_s28 }
 0xb20   :  { %v663_v44 = vpop.permute.xlu0 %662 }
 0xb21   :  { %v665_v53 = vmul.f32 %v663_v44, %v646_v25 }
 0xb23   :  { %731 = vrot.lane.b32.xlu2 %v665_v53, %s1470_s27  ;;  %v1846_v53 = vld [vmem:[%s1908_s3] ss:$0 sm:$0xff] }
 0xb7d   :  { %v732_v55 = vpop.permute.xlu2 %731 }
 0xb7e   :  { %v728_v33 = vpop.permute.xlu1 %727 }
 0xb7f   :  { %v734_v52 = vsel %vm151_vm6, %v728_v33, %v732_v55  ;;  %1257 = vmatmul.msk.f32.vlgmr.msra.gmra.mxu3 %vm151_vm6, %v728_v33 }
 0xb80   :  { %1255 = vmatmul.msk.f32.vlgmr.msra.gmra.mxu2 %vm218_vm7, %v734_v52  ;;  %1067 = vmatpush.msra.mxu3 %v1536_v3 }
 0xb82   :  { %1068 = vmatpush.msra.mxu3 %v1544_v6 }
 0xb84   :  { %1069 = vmatpush.msra.mxu3 %v1552_v8 }
 0xb86   :  { %1070 = vmatpush.msra.mxu3 %v1557_v9 }
 0xc02   :  { %v814_v45 = vpop.f32.mrf.mxu3 }
 0xc03   :  { %v817_v58 = vadd.f32 %v814_v45, %v127_v57  ;;  %v755_v59 = vpop.f32.mrf.mxu2 }
 0xc04   :  { %v756_v60 = vadd.f32 %v1685_v54, %v755_v59 }
 0xc05   :  { %1356 = vtanh.f32 %v817_v58  ;;  %v1258_v3 = vmul.f32 -1.442695, %v817_v58 }
 0xc06   :  { %1358 = vtanh.f32 %v756_v60  ;;  %v1256_v6 = vmul.f32 -1.442695, %v756_v60 }
 0xc07   :  { %1360 = vpow2.f32 %v1258_v3 }
 0xc08   :  { %1362 = vpow2.f32 %v1256_v6 }
 0xc0b   :  { %v1357_v61 = vpop.eup %1356 }
 0xc0c   :  { %v1359_v62 = vpop.eup %1358  ;;  %840 = vrot.lane.b32.xlu0 %v1357_v61, %s1470_s27 }
 0xc0d   :  { %780 = vrot.lane.b32.xlu1 %v1359_v62, %s1470_s27  ;;  %v1361_v8 = vpop.eup %1360 }
 0xc0e   :  { %v1363_v9 = vpop.eup %1362  ;;  %v821_v13 = vadd.f32 1.0, %v1361_v8 }
 0xc0f   :  { %v761_v37 = vadd.f32 1.0, %v1363_v9 }
 0xc10   :  { %1364 = vrcp.f32 %v821_v13  ;;  %v833_v1 = vand.u32 2147483648, %v821_v13  ;;  %vm827_vm0 = vweird.f32 %v821_v13  ;;  %v831_v4 = vand.u32 2147483647, %v821_v13 }
 0xc11   :  { %1366 = vrcp.f32 %v761_v37  ;;  %v773_v5 = vand.u32 2147483648, %v761_v37  ;;  %vm767_vm3 = vweird.f32 %v761_v37  ;;  %v771_v7 = vand.u32 2147483647, %v761_v37 }
 0xc12   :  { %v834_v12 = vor.u32 1.1754944e-38, %v833_v1  ;;  %vm832_vm5 = vcmp.eq.f32.partialorder %v831_v4, 8.507059e+37 }
 0xc13   :  { %v774_v15 = vor.u32 1.1754944e-38, %v773_v5  ;;  %vm772_vm8 = vcmp.eq.f32.partialorder %v771_v7, 8.507059e+37 }
 0xc16   :  { %v1365_v63 = vpop.eup %1364 }
 0xc17   :  { %v1367_v0 = vpop.eup %1366  ;;  %v823_v38 = vmul.f32 %v1365_v63, %v821_v13  ;;  %vm828_vm14 = vweird.f32 %v1365_v63 }
 0xc18   :  { %v763_v39 = vmul.f32 %v1367_v0, %v761_v37  ;;  %vm768_vm15 = vweird.f32 %v1367_v0  ;;  %vm829_vm2 = vmor %vm827_vm0, %vm828_vm14 }
 0xc19   :  { %v824_v40 = vsub.f32 1.0, %v823_v38  ;;  %vm769_vm4 = vmor %vm767_vm3, %vm768_vm15 }
 0xc1a   :  { %v764_v41 = vsub.f32 1.0, %v763_v39 }
 0xc1b   :  { %v825_v42 = vmul.f32 %v1365_v63, %v824_v40 }
 0xc1c   :  { %v765_v43 = vmul.f32 %v1367_v0, %v764_v41 }
 0xc1d   :  { %v826_v46 = vadd.f32 %v1365_v63, %v825_v42 }
 0xc1e   :  { %v766_v2 = vadd.f32 %v1367_v0, %v765_v43 }
 0xc1f   :  { %v830_v10 = vsel %vm829_vm2, %v1365_v63, %v826_v46 }
 0xc20   :  { %v770_v14 = vsel %vm769_vm4, %v1367_v0, %v766_v2  ;;  %v835_v17 = vsel %vm832_vm5, %v834_v12, %v830_v10 }
 0xc21   :  { %v775_v20 = vsel %vm772_vm8, %v774_v15, %v770_v14  ;;  %v838_v22 = vmul.f32 %v835_v17, %v1798_v47 }
 0xc22   :  { %v778_v26 = vmul.f32 %v775_v20, %v1796_v34  ;;  %v56_v34 = vld [vmem:[%s1905_s0 + $0x30] sm:$0xff] }
 0xc23   :  { %1236 = vmatmul.msk.f32.gmra.mxu0 %vm65_vm1, %v56_v34  ;;  %v1874_v34 = vld [vmem:[%s1910_s5] ss:$0 sm:$0xff] }
 0xc7e   :  { %v841_v16 = vpop.permute.xlu0 %840 }
 0xc7f   :  { %v843_v18 = vmul.f32 %v841_v16, %v835_v17  ;;  %v781_v19 = vpop.permute.xlu1 %780 }
 0xc80   :  { %v783_v21 = vmul.f32 %v781_v19, %v775_v20 }
 0xc81   :  { %845 = vrot.lane.b32.xlu2 %v843_v18, %s1471_s28 }
 0xc82   :  { %785 = vrot.lane.b32.xlu0 %v783_v21, %s1471_s28 }
 0xca0   :  { %v129_v51 = vpop.f32.mrf.mxu0 }
 0xca1   :  { %v130_v49 = vadd.f32 %v1846_v53, %v129_v51 }
 0xcdb   :  { %v846_v23 = vpop.permute.xlu2 %845 }
 0xcdc   :  { %v1824_v24 = vadd.f32 %v846_v23, %v838_v22 }
 0xcde   :  { %1368 = vtanh.f32 %v1824_v24 }
 0xce4   :  { %v1369_v25 = vpop.eup %1368 }
 0xce5   :  { %851 = vrot.lane.b32.xlu1 %v1369_v25, %s1470_s27 }
 0xcf4   :  { %v786_v27 = vpop.permute.xlu0 %785 }
 0xcf5   :  { %v1829_v28 = vadd.f32 %v786_v27, %v778_v26 }
 0xcf7   :  { %1370 = vtanh.f32 %v1829_v28 }
 0xcfd   :  { %v1371_v29 = vpop.eup %1370 }
 0xcfe   :  { %791 = vrot.lane.b32.xlu2 %v1371_v29, %s1470_s27  ;;  %v133_v29 = vadd.f32 %v1846_v53, %v1567_v11 }
 0xd57   :  { %v852_v30 = vpop.permute.xlu1 %851 }
 0xd58   :  { %v854_v31 = vmul.f32 %v852_v30, %v835_v17  ;;  %v792_v32 = vpop.permute.xlu2 %791 }
 0xd59   :  { %v794_v36 = vmul.f32 %v792_v32, %v775_v20 }
 0xd5a   :  { %856 = vrot.lane.b32.xlu0 %v854_v31, %s1471_s28 }
 0xd5b   :  { %860 = vrot.lane.b32.xlu1 %v794_v36, %s1470_s27 }
 0xdcc   :  { %v857_v47 = vpop.permute.xlu0 %856 }
 0xdcd   :  { %1261 = vmatmul.msk.f32.vlgmr.msrb.gmra.mxu3 %vm151_vm6, %v857_v47  ;;  %v861_v48 = vpop.permute.xlu1 %860 }
 0xdce   :  { %v863_v50 = vsel %vm151_vm6, %v857_v47, %v861_v48 }
 0xdcf   :  { %1259 = vmatmul.msk.f32.vlgmr.msra.gmra.mxu1 %vm218_vm7, %v863_v50 }
 0xe4c   :  { %v884_v35 = vpop.f32.mrf.mxu1 }
 0xe4d   :  { %v885_v44 = vadd.f32 %v1685_v54, %v884_v35 }
 0xe4f   :  { %1372 = vtanh.f32 %v885_v44  ;;  %v1260_v57 = vmul.f32 -1.442695, %v885_v44 }
 0xe50   :  { %v943_v55 = vpop.f32.mrf.mxu3 }
 0xe51   :  { %v946_v33 = vadd.f32 %v943_v55, %v130_v49 }
 0xe53   :  { %1374 = vtanh.f32 %v946_v33  ;;  %v1262_v60 = vmul.f32 -1.442695, %v946_v33 }
 0xe54   :  { %1376 = vpow2.f32 %v1260_v57 }
 0xe55   :  { %v1373_v52 = vpop.eup %1372 }
 0xe56   :  { %909 = vrot.lane.b32.xlu2 %v1373_v52, %s1470_s27 }
 0xe59   :  { %v1375_v56 = vpop.eup %1374 }
 0xe5a   :  { %969 = vrot.lane.b32.xlu0 %v1375_v56, %s1470_s27  ;;  %v1377_v54 = vpop.eup %1376 }
 0xe5b   :  { %v890_v45 = vadd.f32 1.0, %v1377_v54 }
 0xe5d   :  { %1378 = vrcp.f32 %v890_v45  ;;  %v902_v8 = vand.u32 2147483648, %v890_v45  ;;  %vm896_vm9 = vweird.f32 %v890_v45  ;;  %v900_v9 = vand.u32 2147483647, %v890_v45 }
 0xe5e   :  { %1380 = vpow2.f32 %v1262_v60 }
 0xe5f   :  { %v903_v63 = vor.u32 1.1754944e-38, %v902_v8  ;;  %vm901_vm11 = vcmp.eq.f32.partialorder %v900_v9, 8.507059e+37 }
 0xe63   :  { %v1379_v58 = vpop.eup %1378 }
 0xe64   :  { %v892_v59 = vmul.f32 %v1379_v58, %v890_v45  ;;  %v1381_v3 = vpop.eup %1380  ;;  %vm897_vm1 = vweird.f32 %v1379_v58 }
 0xe65   :  { %v950_v13 = vadd.f32 1.0, %v1381_v3  ;;  %vm898_vm10 = vmor %vm896_vm9, %vm897_vm1 }
 0xe66   :  { %v893_v61 = vsub.f32 1.0, %v892_v59 }
 0xe67   :  { %1382 = vrcp.f32 %v950_v13  ;;  %v962_v1 = vand.u32 2147483648, %v950_v13  ;;  %vm956_vm13 = vweird.f32 %v950_v13  ;;  %v960_v2 = vand.u32 2147483647, %v950_v13 }
 0xe68   :  { %v894_v62 = vmul.f32 %v1379_v58, %v893_v61 }
 0xe69   :  { %v963_v5 = vor.u32 1.1754944e-38, %v962_v1  ;;  %vm961_vm15 = vcmp.eq.f32.partialorder %v960_v2, 8.507059e+37 }
 0xe6a   :  { %v895_v6 = vadd.f32 %v1379_v58, %v894_v62 }
 0xe6c   :  { %v899_v37 = vsel %vm898_vm10, %v1379_v58, %v895_v6 }
 0xe6d   :  { %v904_v38 = vsel %vm901_vm11, %v903_v63, %v899_v37  ;;  %v1383_v40 = vpop.eup %1382 }
 0xe6e   :  { %v952_v41 = vmul.f32 %v1383_v40, %v950_v13  ;;  %vm957_vm12 = vweird.f32 %v1383_v40  ;;  %v907_v14 = vmul.f32 %v904_v38, %v1829_v28 }
 0xe6f   :  { %vm958_vm14 = vmor %vm956_vm13, %vm957_vm12  ;;  %vm1206_vm13 = vcmask 7168  }
 0xe70   :  { %v953_v42 = vsub.f32 1.0, %v952_v41 }
 0xe72   :  { %v954_v43 = vmul.f32 %v1383_v40, %v953_v42 }
 0xe74   :  { %v955_v46 = vadd.f32 %v1383_v40, %v954_v43 }
 0xe76   :  { %v959_v4 = vsel %vm958_vm14, %v1383_v40, %v955_v46 }
 0xe77   :  { %v964_v10 = vsel %vm961_vm15, %v963_v5, %v959_v4 }
 0xe78   :  { %v967_v17 = vmul.f32 %v964_v10, %v1824_v24 }
 0xeb0   :  { %v910_v0 = vpop.permute.xlu2 %909 }
 0xeb1   :  { %v912_v39 = vmul.f32 %v910_v0, %v904_v38 }
 0xeb3   :  { %914 = vrot.lane.b32.xlu1 %v912_v39, %s1471_s28 }
 0xecc   :  { %v970_v7 = vpop.permute.xlu0 %969 }
 0xecd   :  { %v972_v12 = vmul.f32 %v970_v7, %v964_v10 }
 0xecf   :  { %974 = vrot.lane.b32.xlu2 %v972_v12, %s1471_s28 }
 0xf25   :  { %v915_v15 = vpop.permute.xlu1 %914 }
 0xf26   :  { %v1854_v16 = vadd.f32 %v915_v15, %v907_v14 }
 0xf28   :  { %1384 = vtanh.f32 %v1854_v16 }
 0xf29   :  { %v975_v18 = vpop.permute.xlu2 %974 }
 0xf2a   :  { %v1858_v19 = vadd.f32 %v975_v18, %v967_v17 }
 0xf2c   :  { %1386 = vtanh.f32 %v1858_v19 }
 0xf2e   :  { %v1385_v20 = vpop.eup %1384 }
 0xf2f   :  { %920 = vrot.lane.b32.xlu0 %v1385_v20, %s1470_s27 }
 0xf32   :  { %v1387_v21 = vpop.eup %1386 }
 0xf33   :  { %980 = vrot.lane.b32.xlu1 %v1387_v21, %s1470_s27 }
 0xfa1   :  { %v921_v22 = vpop.permute.xlu0 %920 }
 0xfa2   :  { %v923_v23 = vmul.f32 %v921_v22, %v904_v38 }
 0xfa4   :  { %989 = vrot.lane.b32.xlu0 %v923_v23, %s1470_s27 }
 0xfa5   :  { %v981_v25 = vpop.permute.xlu1 %980 }
 0xfa6   :  { %v983_v26 = vmul.f32 %v981_v25, %v964_v10  ;;  %v1282_v25 = vld [vmem:[%s1911_s6] ss:$0 sm:$0xff]  ;;  %s1473_s6 = smov [#allocation6]  }
 0xfa7   :  { %s1215_s19 = sshll.u32 %s1473_s6, 4  ;;  %s1216_s19 = int_to_ptr.vmem [resolvable:$true] %s1215_s19 }
 0xfa8   :  { %985 = vrot.lane.b32.xlu2 %v983_v26, %s1471_s28 }
0x1002   :  { %v986_v24 = vpop.permute.xlu2 %985 }
0x1003   :  { %1265 = vmatmul.msk.f32.vlgmr.msra.gmra.mxu3 %vm151_vm6, %v986_v24 }
0x1016   :  { %v990_v27 = vpop.permute.xlu0 %989 }
0x1017   :  { %v992_v28 = vsel %vm151_vm6, %v986_v24, %v990_v27 }
0x1018   :  { %1263 = vmatmul.msk.f32.vlgmr.msrb.gmra.mxu2 %vm218_vm7, %v992_v28 }
0x1086   :  { %v1072_v30 = vpop.f32.mrf.mxu3 }
0x1087   :  { %v1075_v31 = vadd.f32 %v1072_v30, %v133_v29 }
0x1089   :  { %1388 = vtanh.f32 %v1075_v31  ;;  %v1266_v50 = vmul.f32 -1.442695, %v1075_v31 }
0x108f   :  { %v1389_v32 = vpop.eup %1388 }
0x1090   :  { %1098 = vrot.lane.b32.xlu2 %v1389_v32, %s1470_s27 }
0x109b   :  { %v1013_v36 = vpop.f32.mrf.mxu2 }
0x109c   :  { %v1014_v47 = vadd.f32 %v1874_v34, %v1013_v36 }
0x109e   :  { %1390 = vtanh.f32 %v1014_v47  ;;  %v1264_v54 = vmul.f32 -1.442695, %v1014_v47 }
0x109f   :  { %1392 = vpow2.f32 %v1266_v50 }
0x10a4   :  { %v1391_v48 = vpop.eup %1390 }
0x10a5   :  { %1038 = vrot.lane.b32.xlu1 %v1391_v48, %s1470_s27  ;;  %v1393_v11 = vpop.eup %1392 }
0x10a6   :  { %v1079_v51 = vadd.f32 1.0, %v1393_v11 }
0x10a8   :  { %1394 = vrcp.f32 %v1079_v51  ;;  %v1091_v33 = vand.u32 2147483648, %v1079_v51  ;;  %vm1085_vm2 = vweird.f32 %v1079_v51  ;;  %v1089_v52 = vand.u32 2147483647, %v1079_v51 }
0x10a9   :  { %1396 = vpow2.f32 %v1264_v54 }
0x10aa   :  { %v1092_v57 = vor.u32 1.1754944e-38, %v1091_v33  ;;  %vm1090_vm4 = vcmp.eq.f32.partialorder %v1089_v52, 8.507059e+37 }
0x10ae   :  { %v1395_v35 = vpop.eup %1394 }
0x10af   :  { %v1081_v44 = vmul.f32 %v1395_v35, %v1079_v51  ;;  %vm1086_vm0 = vweird.f32 %v1395_v35  ;;  %v1397_v60 = vpop.eup %1396 }
0x10b0   :  { %vm1087_vm3 = vmor %vm1085_vm2, %vm1086_vm0  ;;  %v1019_v61 = vadd.f32 1.0, %v1397_v60 }
0x10b1   :  { %v1082_v53 = vsub.f32 1.0, %v1081_v44 }
0x10b2   :  { %1398 = vrcp.f32 %v1019_v61  ;;  %v1031_v13 = vand.u32 2147483648, %v1019_v61  ;;  %vm1025_vm8 = vweird.f32 %v1019_v61  ;;  %v1029_v37 = vand.u32 2147483647, %v1019_v61 }
0x10b3   :  { %v1083_v49 = vmul.f32 %v1395_v35, %v1082_v53 }
0x10b4   :  { %v1032_v0 = vor.u32 1.1754944e-38, %v1031_v13  ;;  %vm1030_vm9 = vcmp.eq.f32.partialorder %v1029_v37, 8.507059e+37 }
0x10b5   :  { %v1084_v55 = vadd.f32 %v1395_v35, %v1083_v49 }
0x10b7   :  { %v1088_v56 = vsel %vm1087_vm3, %v1395_v35, %v1084_v55 }
0x10b8   :  { %v1093_v58 = vsel %vm1090_vm4, %v1092_v57, %v1088_v56  ;;  %v1399_v62 = vpop.eup %1398  ;;  %v1283_v57 = vld [vmem:[#allocation2] ss:$0 sm:$0xff] }
0x10b9   :  { %v1021_v3 = vmul.f32 %v1399_v62, %v1019_v61  ;;  %vm1026_vm5 = vweird.f32 %v1399_v62  ;;  %v1096_v41 = vmul.f32 %v1093_v58, %v1858_v19 }
0x10ba   :  { %vm1027_vm1 = vmor %vm1025_vm8, %vm1026_vm5 }
0x10bb   :  { %v1022_v6 = vsub.f32 1.0, %v1021_v3 }
0x10bd   :  { %v1023_v8 = vmul.f32 %v1399_v62, %v1022_v6 }
0x10bf   :  { %v1024_v9 = vadd.f32 %v1399_v62, %v1023_v8 }
0x10c1   :  { %v1028_v63 = vsel %vm1027_vm1, %v1399_v62, %v1024_v9 }
0x10c2   :  { %v1033_v39 = vsel %vm1030_vm9, %v1032_v0, %v1028_v63 }
0x10c3   :  { %v1036_v1 = vmul.f32 %v1033_v39, %v1854_v16 }
0x10ea   :  { %v1099_v45 = vpop.permute.xlu2 %1098 }
0x10eb   :  { %v1101_v59 = vmul.f32 %v1099_v45, %v1093_v58 }
0x10ed   :  { %1103 = vrot.lane.b32.xlu1 %v1101_v59, %s1471_s28 }
0x1117   :  { %v1039_v38 = vpop.permute.xlu1 %1038 }
0x1118   :  { %v1041_v40 = vmul.f32 %v1039_v38, %v1033_v39 }
0x111a   :  { %1043 = vrot.lane.b32.xlu0 %v1041_v40, %s1471_s28 }
0x115f   :  { %v1104_v42 = vpop.permute.xlu1 %1103 }
0x1160   :  { %v1106_v43 = vadd.f32 %v1104_v42, %v1096_v41 }
0x1162   :  { %1400 = vtanh.f32 %v1106_v43 }
0x1168   :  { %v1401_v46 = vpop.eup %1400 }
0x1169   :  { %1109 = vrot.lane.b32.xlu0 %v1401_v46, %s1470_s27 }
0x118c   :  { %v1044_v2 = vpop.permute.xlu0 %1043 }
0x118d   :  { %v1046_v4 = vadd.f32 %v1044_v2, %v1036_v1 }
0x118f   :  { %1402 = vtanh.f32 %v1046_v4 }
0x1195   :  { %v1403_v5 = vpop.eup %1402 }
0x1196   :  { %1049 = vrot.lane.b32.xlu2 %v1403_v5, %s1470_s27 }
0x11db   :  { %v1110_v7 = vpop.permute.xlu0 %1109 }
0x11dc   :  { %v1112_v10 = vmul.f32 %v1110_v7, %v1093_v58 }
0x11de   :  { %1114 = vrot.lane.b32.xlu1 %v1112_v10, %s1471_s28 }
0x11f0   :  { %v1050_v12 = vpop.permute.xlu2 %1049 }
0x11f1   :  { %v1052_v14 = vmul.f32 %v1050_v12, %v1033_v39 }
0x11f3   :  { %1118 = vrot.lane.b32.xlu2 %v1052_v14, %s1470_s27 }
0x124d   :  { %v1119_v15 = vpop.permute.xlu2 %1118 }
0x1250   :  { %v1115_v17 = vpop.permute.xlu1 %1114 }
0x1251   :  { %v1121_v18 = vsel %vm151_vm6, %v1115_v17, %v1119_v15 }
0x1252   :  { %1267 = vmatmul.msk.f32.vlgmr.msrb.gmra.mxu0 %vm218_vm7, %v1121_v18 }
0x12cf   :  { %v1142_v16 = vpop.f32.mrf.mxu0 }
0x12d0   :  { %v1143_v19 = vadd.f32 %v1874_v34, %v1142_v16 }
0x12d2   :  { %1404 = vtanh.f32 %v1143_v19  ;;  %v1268_v21 = vmul.f32 -1.442695, %v1143_v19 }
0x12d4   :  { %1406 = vpow2.f32 %v1268_v21 }
0x12d8   :  { %v1405_v20 = vpop.eup %1404 }
0x12d9   :  { %1167 = vrot.lane.b32.xlu0 %v1405_v20, %s1470_s27 }
0x12da   :  { %v1407_v22 = vpop.eup %1406 }
0x12db   :  { %v1148_v23 = vadd.f32 1.0, %v1407_v22 }
0x12dd   :  { %1408 = vrcp.f32 %v1148_v23  ;;  %v1160_v30 = vand.u32 2147483648, %v1148_v23  ;;  %vm1154_vm10 = vweird.f32 %v1148_v23  ;;  %v1158_v31 = vand.u32 2147483647, %v1148_v23 }
0x12df   :  { %v1161_v36 = vor.u32 1.1754944e-38, %v1160_v30  ;;  %vm1159_vm12 = vcmp.eq.f32.partialorder %v1158_v31, 8.507059e+37 }
0x12e1   :  { %1190 = vrot.lane.b32.xlu0 %v1282_v25, %s1472_s18 }
0x12e3   :  { %v1409_v26 = vpop.eup %1408 }
0x12e4   :  { %v1150_v24 = vmul.f32 %v1409_v26, %v1148_v23  ;;  %vm1155_vm7 = vweird.f32 %v1409_v26 }
0x12e5   :  { %vm1156_vm11 = vmor %vm1154_vm10, %vm1155_vm7 }
0x12e6   :  { %v1151_v27 = vsub.f32 1.0, %v1150_v24 }
0x12e8   :  { %v1152_v28 = vmul.f32 %v1409_v26, %v1151_v27 }
0x12ea   :  { %v1153_v29 = vadd.f32 %v1409_v26, %v1152_v28 }
0x12ec   :  { %v1157_v32 = vsel %vm1156_vm11, %v1409_v26, %v1153_v29 }
0x12ed   :  { %v1162_v47 = vsel %vm1159_vm12, %v1161_v36, %v1157_v32 }
0x12ee   :  { %v1165_v50 = vmul.f32 %v1162_v47, %v1046_v4 }
0x134b   :  { %v1168_v34 = vpop.permute.xlu0 %1167 }
0x134c   :  { %v1170_v48 = vmul.f32 %v1168_v34, %v1162_v47 }
0x134e   :  { %1172 = vrot.lane.b32.xlu1 %v1170_v48, %s1471_s28 }
0x1353   :  { %v1191_v53 = vpop.permute.xlu0 %1190 }
0x13c0   :  { %v1173_v11 = vpop.permute.xlu1 %1172 }
0x13c1   :  { %v1175_v51 = vadd.f32 %v1173_v11, %v1165_v50 }
0x13c3   :  { %1410 = vtanh.f32 %v1175_v51 }
0x13c9   :  { %v1411_v35 = vpop.eup %1410 }
0x13ca   :  { %1178 = vrot.lane.b32.xlu2 %v1411_v35, %s1470_s27 }
0x1424   :  { %v1179_v44 = vpop.permute.xlu2 %1178 }
0x1425   :  { %v1181_v49 = vmul.f32 %v1179_v44, %v1162_v47 }
0x1427   :  { %v1193_v55 = vmul.f32 %v1191_v53, %v1181_v49  ;;  %1183 = vrot.lane.b32.xlu0 %v1181_v49, %s1471_s28 }
0x1429   :  { %1195 = vrot.lane.b32.xlu1 %v1193_v55, %s1471_s28 }
0x1499   :  { %v1184_v33 = vpop.permute.xlu0 %1183 }
0x149a   :  { %1186 = vst.msk [vmem:[#allocation6] sm:$0xff] %vm151_vm6, %v1184_v33 }
0x149b   :  { %v1196_v52 = vpop.permute.xlu1 %1195  ;;  %1220 = dma.vmem_to_hbm [thread:$0]  %s1216_s19, 128, %s1218_s2, [#allocation5]  }
0x149c   :  { %v1198_v56 = vsel %vm151_vm6, %v1196_v52, 0.0 }
0x149d   :  { %1199 = vadd.xlane.f32.xlu2 %v1198_v56 }
0x1510   :  { %v1200_v54 = vpop.xlane.xlu2 %1199 }
0x1511   :  { %v1205_v45 = vadd.f32 %v1283_v57, %v1200_v54 }
0x1513   :  { %1207 = vst.msk [vmem:[%s1913_s8] sm:$0xff] %vm1206_vm13, %v1205_v45 }
0x1514   :  { %1464 = dma.done.wait [#allocation5], 128  }
0x1515   :  { %1465 = vsyncadd [#allocation5], 4294967168 }
0x1516   :  { %1227 = vsyncpa [#allocation4], 1 }
0x1517   :  { %1228 = vsyncpa [#allocation5], 1 }

</bundles_post_ra>
